<compile_context>
chip_gen: v7x
topology: tpu7x:2x2x1
jax: 0.10.0
libtpu: 0.0.40
codegen_flags: <defaults>
</compile_context>

<pallas_src>
import jax
import jax.numpy as jnp
from jax.experimental import pallas as pl

# ---------------- model dimensions (from the PyTorch script) ----------------
D_MODEL = 2            # problemDim / input_size
HIDDEN = 64            # hidden_size
NUM_LAYERS = 1         # num_layers (single-layer LSTM)
NUM_CLASSES = 5        # args.num_classes comes from argparse; fixed to 5 here

BATCH = 2
SEQ_LEN = 8

H = HIDDEN
HP = 128               # hidden padded to one full 128-lane vreg width
GP = 4 * HP            # 512 gate columns: each PyTorch gate [i|f|g|o] starts
                       # on a 128-lane boundary, valid 64 cols + 64 zero cols

# ---- packed parameter slab layout (one array, one DMA) ----------------------
COL_GATES = 0                  # cols [  0, 512): W_hh / W_ih / b_lstm (gate-padded)
COL_FC = GP                    # cols [512, 640): fc_shared
COL_HEAD = GP + HP             # cols [640, 768): fused classifier|regressor head
W_COLS = GP + 2 * HP           # 768
ROW_IH = HP                    # rows 128,129 : W_ih (input channels 0 and 1)
ROW_B = HP + D_MODEL           # row  130     : all biases [b_lstm | b_fc | b_head]
W_ROWS = 136                   # rows padded to a multiple of 8 sublanes


def make_kernel(B, L):
    """Pallas kernel closed over the static batch / sequence sizes."""
    LD = L * D_MODEL

    def kernel(x_ref, w_ref, out_ref):
        # ---- unpack the packed slab (tile-aligned static views, loaded once) ----
        w_hh = w_ref[0:HP, COL_GATES:COL_GATES + GP]            # (128, 512)
        w_fc = w_ref[0:HP, COL_FC:COL_FC + HP]                  # (128, 128)
        w_head = w_ref[0:HP, COL_HEAD:COL_HEAD + HP]            # (128, 128)

        # extra rows (W_ih + biases) via one aligned (8, 768) load, then value slices
        extra = w_ref[HP:HP + 8, :]                             # rows 128..135
        w_ih0 = extra[0:1, COL_GATES:COL_GATES + GP]            # (1, 512)
        w_ih1 = extra[1:2, COL_GATES:COL_GATES + GP]            # (1, 512)
        b_row = extra[D_MODEL:D_MODEL + 1, :]                   # (1, 768)
        b_lstm = b_row[:, COL_GATES:COL_GATES + GP]             # (1, 512)  (b_ih + b_hh)
        b_fc = b_row[:, COL_FC:COL_FC + HP]                     # (1, 128)
        b_head = b_row[:, COL_HEAD:COL_HEAD + HP]               # (1, 128)

        x2 = x_ref[...]                                         # (B, L*D)

        # ---- LSTM recurrence (loop-carried; L small -> fully unrolled) ----
        h = jnp.zeros((B, HP), jnp.float32)
        c = jnp.zeros((B, HP), jnp.float32)
        for t in range(L):
            c0 = t * D_MODEL
            # K=2 input projection on the VPU (outer-product broadcast MACs);
            # padded gate lanes stay exactly 0 (zero weight cols + zero bias).
            xg = (x2[:, c0:c0 + 1] * w_ih0
                  + x2[:, c0 + 1:c0 + 2] * w_ih1
                  + b_lstm)                                     # (B, 512)
            g = xg + jnp.dot(h, w_hh, preferred_element_type=jnp.float32)

            # vreg-granular nonlinearities on 128-aligned gate blocks [i|f|g|o]
            s_if = jax.nn.sigmoid(g[:, 0:2 * HP])               # i and f together
            i_g = s_if[:, 0:HP]
            f_g = s_if[:, HP:2 * HP]
            g_g = jnp.tanh(g[:, 2 * HP:3 * HP])
            o_g = jax.nn.sigmoid(g[:, 3 * HP:4 * HP])

            c = f_g * c + i_g * g_g
            h = o_g * jnp.tanh(c)
        # h == backbone(x)[0][:, -1, :] in lanes [0, 64); lanes [64, 128) are 0

        # ---- heads: fc_shared + ReLU, then fused classifier|regressor ----
        fc = jnp.maximum(
            jnp.dot(h, w_fc, preferred_element_type=jnp.float32) + b_fc, 0.0)
        out_ref[...] = jnp.dot(fc, w_head,
                               preferred_element_type=jnp.float32) + b_head

    return kernel


def init_params(key):
    """Deterministic synthetic parameters (PyTorch shapes, pre-transposed)."""
    ks = jax.random.split(key, 9)
    scale = 1.0 / jnp.sqrt(jnp.float32(HIDDEN))

    def u(k, shape):
        return jax.random.uniform(k, shape, jnp.float32, -scale, scale)

    return dict(
        w_ih=u(ks[0], (D_MODEL, 4 * H)),                # weight_ih_l0.T
        w_hh=u(ks[1], (H, 4 * H)),                      # weight_hh_l0.T
        b_lstm=u(ks[2], (1, 4 * H)) + u(ks[3], (1, 4 * H)),   # bias_ih + bias_hh
        w_fc=u(ks[4], (H, H)),                          # fc_shared.weight.T
        b_fc=u(ks[5], (1, H)),
        w_cls=u(ks[6], (H, NUM_CLASSES)),               # classifier.weight.T
        b_cls=u(ks[7], (1, NUM_CLASSES)),
        w_reg=u(ks[8], (H, 1)),                         # regressor.weight.T
        b_reg=jnp.zeros((1, 1), jnp.float32),
    )


def _pad_gate_cols(w):
    """(..., 4H) -> (..., 4*HP): each gate's 64 valid cols start at a 128 boundary."""
    blocks = []
    for k in range(4):
        blk = w[..., k * H:(k + 1) * H]
        blocks.append(blk)
        blocks.append(jnp.zeros(blk.shape[:-1] + (HP - H,), w.dtype))
    return jnp.concatenate(blocks, axis=-1)


def pack_params(p):
    """Host-side packing into ONE (136, 768) slab -> 2 total input DMAs (x + slab)."""
    w_hh_pad = jnp.zeros((HP, GP), jnp.float32).at[:H, :].set(_pad_gate_cols(p["w_hh"]))
    w_ih_pad = _pad_gate_cols(p["w_ih"])                                   # (2, 512)
    b_lstm_pad = _pad_gate_cols(p["b_lstm"])                               # (1, 512)

    w_fc_pad = jnp.zeros((HP, HP), jnp.float32).at[:H, :H].set(p["w_fc"])
    b_fc_pad = jnp.zeros((1, HP), jnp.float32).at[:, :H].set(p["b_fc"])

    w_head_pad = jnp.zeros((HP, HP), jnp.float32)
    w_head_pad = w_head_pad.at[:H, :NUM_CLASSES].set(p["w_cls"])
    w_head_pad = w_head_pad.at[:H, NUM_CLASSES:NUM_CLASSES + 1].set(p["w_reg"])
    b_head_pad = jnp.zeros((1, HP), jnp.float32)
    b_head_pad = b_head_pad.at[:, :NUM_CLASSES].set(p["b_cls"])
    b_head_pad = b_head_pad.at[:, NUM_CLASSES:NUM_CLASSES + 1].set(p["b_reg"])

    slab = jnp.zeros((W_ROWS, W_COLS), jnp.float32)
    slab = slab.at[0:HP, COL_GATES:COL_GATES + GP].set(w_hh_pad)
    slab = slab.at[0:HP, COL_FC:COL_FC + HP].set(w_fc_pad)
    slab = slab.at[0:HP, COL_HEAD:COL_HEAD + HP].set(w_head_pad)
    slab = slab.at[ROW_IH:ROW_IH + D_MODEL, COL_GATES:COL_GATES + GP].set(w_ih_pad)
    slab = slab.at[ROW_B, COL_GATES:COL_GATES + GP].set(b_lstm_pad[0])
    slab = slab.at[ROW_B, COL_FC:COL_FC + HP].set(b_fc_pad[0])
    slab = slab.at[ROW_B, COL_HEAD:COL_HEAD + HP].set(b_head_pad[0])
    return slab


def lstm_classifier_forward(x, w_slab):
    B, L, D = x.shape
    assert D == D_MODEL
    # Contiguous row-major reshape only (XLA bitcast, no copy) — replaces the
    # previous transpose+reshape which was an un-fusable extra dispatch.
    x2 = x.reshape(B, L * D)

    flops = 2 * L * B * HP * GP + 2 * (2 * B * HP * HP) + L * B * GP * 8
    transcendentals = L * B * (GP + HP)
    bytes_accessed = W_ROWS * W_COLS * 4 + B * L * D * 4 + B * HP * 4

    # Single invocation, no grid: everything is VMEM-resident (<0.5 MB), so
    # tiling would only add per-grid-step overhead on every generation.
    out = pl.pallas_call(
        make_kernel(B, L),
        out_shape=jax.ShapeDtypeStruct((B, HP), jnp.float32),
        cost_estimate=pl.CostEstimate(flops=flops,
                                      transcendentals=transcendentals,
                                      bytes_accessed=bytes_accessed),
    )(x2, w_slab)

    class_logits = out[:, :NUM_CLASSES]        # (B, num_classes)
    mass_pred = out[:, NUM_CLASSES]            # (B,) == regressor(...).squeeze(-1)
    return class_logits, mass_pred


def reference_forward(x, p):
    """Pure-JAX reference implementing the same PyTorch forward (unpadded)."""
    B, L, _ = x.shape
    h = jnp.zeros((B, H), jnp.float32)
    c = jnp.zeros((B, H), jnp.float32)
    for t in range(L):
        g = x[:, t, :] @ p["w_ih"] + h @ p["w_hh"] + p["b_lstm"]
        i_g = jax.nn.sigmoid(g[:, 0:H])
        f_g = jax.nn.sigmoid(g[:, H:2 * H])
        g_g = jnp.tanh(g[:, 2 * H:3 * H])
        o_g = jax.nn.sigmoid(g[:, 3 * H:4 * H])
        c = f_g * c + i_g * g_g
        h = o_g * jnp.tanh(c)
    fc = jnp.maximum(h @ p["w_fc"] + p["b_fc"], 0.0)
    return fc @ p["w_cls"] + p["b_cls"], (fc @ p["w_reg"] + p["b_reg"])[:, 0]


if __name__ == "__main__":
    key = jax.random.PRNGKey(0)
    kx, kp = jax.random.split(key)
    x = jax.random.normal(kx, (BATCH, SEQ_LEN, D_MODEL), jnp.float32)
    params = init_params(kp)
    w_slab = pack_params(params)

    class_logits, mass_pred = lstm_classifier_forward(x, w_slab)
    jax.block_until_ready((class_logits, mass_pred))

    assert class_logits.shape == (BATCH, NUM_CLASSES)
    assert mass_pred.shape == (BATCH,)

    # correctness check against a pure-JAX reference of the same module
    ref_logits, ref_mass = reference_forward(x, params)
    assert jnp.allclose(class_logits, ref_logits, atol=1e-3, rtol=1e-3)
    assert jnp.allclose(mass_pred, ref_mass, atol=1e-3, rtol=1e-3)

    print("KERNEL_OK")
</pallas_src>

<mosaic_0001>
module attributes {stable_mosaic.version = 11 : i64} {
  func.func @kernel(%arg0: memref<2x16xf32, #tpu.memory_space<vmem>>, %arg1: memref<136x768xf32, #tpu.memory_space<vmem>>, %arg2: memref<2x128xf32, #tpu.memory_space<vmem>>) attributes {dimension_semantics = [], scalar_prefetch = 0 : i64, scratch_operands = 0 : i64, tpu.core_type = #tpu.core_type<tc>} {
    %c0 = arith.constant 0 : index
    %c0_0 = arith.constant 0 : index
    %0 = vector.load %arg1[%c0, %c0_0] : memref<136x768xf32, #tpu.memory_space<vmem>>, vector<128x512xf32>
    %c0_1 = arith.constant 0 : index
    %c512 = arith.constant 512 : index
    %1 = vector.load %arg1[%c0_1, %c512] : memref<136x768xf32, #tpu.memory_space<vmem>>, vector<128x128xf32>
    %c0_2 = arith.constant 0 : index
    %c640 = arith.constant 640 : index
    %2 = vector.load %arg1[%c0_2, %c640] : memref<136x768xf32, #tpu.memory_space<vmem>>, vector<128x128xf32>
    %c128 = arith.constant 128 : index
    %c0_3 = arith.constant 0 : index
    %3 = vector.load %arg1[%c128, %c0_3] : memref<136x768xf32, #tpu.memory_space<vmem>>, vector<8x768xf32>
    %4 = vector.extract_strided_slice %3 {offsets = [0, 0], sizes = [1, 512], strides = [1, 1]} : vector<8x768xf32> to vector<1x512xf32>
    %5 = vector.extract_strided_slice %3 {offsets = [1, 0], sizes = [1, 512], strides = [1, 1]} : vector<8x768xf32> to vector<1x512xf32>
    %6 = vector.extract_strided_slice %3 {offsets = [2, 0], sizes = [1, 768], strides = [1, 1]} : vector<8x768xf32> to vector<1x768xf32>
    %7 = vector.extract_strided_slice %6 {offsets = [0, 0], sizes = [1, 512], strides = [1, 1]} : vector<1x768xf32> to vector<1x512xf32>
    %8 = vector.extract_strided_slice %6 {offsets = [0, 512], sizes = [1, 128], strides = [1, 1]} : vector<1x768xf32> to vector<1x128xf32>
    %9 = vector.extract_strided_slice %6 {offsets = [0, 640], sizes = [1, 128], strides = [1, 1]} : vector<1x768xf32> to vector<1x128xf32>
    %c0_4 = arith.constant 0 : index
    %c0_5 = arith.constant 0 : index
    %10 = vector.load %arg0[%c0_4, %c0_5] : memref<2x16xf32, #tpu.memory_space<vmem>>, vector<2x16xf32>
    %cst = arith.constant 0.000000e+00 : f32
    %11 = vector.broadcast %cst : f32 to vector<2x128xf32>
    %cst_6 = arith.constant 0.000000e+00 : f32
    %12 = vector.broadcast %cst_6 : f32 to vector<2x128xf32>
    %13 = vector.extract_strided_slice %10 {offsets = [0, 0], sizes = [2, 1], strides = [1, 1]} : vector<2x16xf32> to vector<2x1xf32>
    %14 = vector.broadcast %13 : vector<2x1xf32> to vector<2x512xf32>
    %15 = vector.broadcast %4 : vector<1x512xf32> to vector<2x512xf32>
    %16 = arith.mulf %14, %15 : vector<2x512xf32>
    %17 = vector.extract_strided_slice %10 {offsets = [0, 1], sizes = [2, 1], strides = [1, 1]} : vector<2x16xf32> to vector<2x1xf32>
    %18 = vector.broadcast %17 : vector<2x1xf32> to vector<2x512xf32>
    %19 = vector.broadcast %5 : vector<1x512xf32> to vector<2x512xf32>
    %20 = arith.mulf %18, %19 : vector<2x512xf32>
    %21 = arith.addf %16, %20 : vector<2x512xf32>
    %22 = vector.broadcast %7 : vector<1x512xf32> to vector<2x512xf32>
    %23 = arith.addf %21, %22 : vector<2x512xf32>
    %cst_7 = arith.constant dense<0.000000e+00> : vector<2x512xf32>
    %24 = tpu.matmul %11, %0, %cst_7 {dimension_numbers = #tpu.dot_dimension_numbers<[1], [0], [0], [1], [0, 0, 1, 1], [], []>} : vector<2x128xf32>, vector<128x512xf32>, vector<2x512xf32> -> vector<2x512xf32>
    %25 = arith.addf %23, %24 : vector<2x512xf32>
    %26 = vector.extract_strided_slice %25 {offsets = [0, 0], sizes = [2, 256], strides = [1, 1]} : vector<2x512xf32> to vector<2x256xf32>
    %27 = arith.negf %26 : vector<2x256xf32>
    %28 = math.exp %27 : vector<2x256xf32>
    %cst_8 = arith.constant 1.000000e+00 : f32
    %29 = vector.broadcast %cst_8 : f32 to vector<2x256xf32>
    %30 = arith.addf %29, %28 : vector<2x256xf32>
    %31 = arith.divf %29, %30 : vector<2x256xf32>
    %32 = vector.extract_strided_slice %31 {offsets = [0, 0], sizes = [2, 128], strides = [1, 1]} : vector<2x256xf32> to vector<2x128xf32>
    %33 = vector.extract_strided_slice %31 {offsets = [0, 128], sizes = [2, 128], strides = [1, 1]} : vector<2x256xf32> to vector<2x128xf32>
    %34 = vector.extract_strided_slice %25 {offsets = [0, 256], sizes = [2, 128], strides = [1, 1]} : vector<2x512xf32> to vector<2x128xf32>
    %35 = math.tanh %34 : vector<2x128xf32>
    %36 = vector.extract_strided_slice %25 {offsets = [0, 384], sizes = [2, 128], strides = [1, 1]} : vector<2x512xf32> to vector<2x128xf32>
    %37 = arith.negf %36 : vector<2x128xf32>
    %38 = math.exp %37 : vector<2x128xf32>
    %cst_9 = arith.constant 1.000000e+00 : f32
    %39 = vector.broadcast %cst_9 : f32 to vector<2x128xf32>
    %40 = arith.addf %39, %38 : vector<2x128xf32>
    %41 = arith.divf %39, %40 : vector<2x128xf32>
    %42 = arith.mulf %33, %12 : vector<2x128xf32>
    %43 = arith.mulf %32, %35 : vector<2x128xf32>
    %44 = arith.addf %42, %43 : vector<2x128xf32>
    %45 = math.tanh %44 : vector<2x128xf32>
    %46 = arith.mulf %41, %45 : vector<2x128xf32>
    %47 = vector.extract_strided_slice %10 {offsets = [0, 2], sizes = [2, 1], strides = [1, 1]} : vector<2x16xf32> to vector<2x1xf32>
    %48 = vector.broadcast %47 : vector<2x1xf32> to vector<2x512xf32>
    %49 = vector.broadcast %4 : vector<1x512xf32> to vector<2x512xf32>
    %50 = arith.mulf %48, %49 : vector<2x512xf32>
    %51 = vector.extract_strided_slice %10 {offsets = [0, 3], sizes = [2, 1], strides = [1, 1]} : vector<2x16xf32> to vector<2x1xf32>
    %52 = vector.broadcast %51 : vector<2x1xf32> to vector<2x512xf32>
    %53 = vector.broadcast %5 : vector<1x512xf32> to vector<2x512xf32>
    %54 = arith.mulf %52, %53 : vector<2x512xf32>
    %55 = arith.addf %50, %54 : vector<2x512xf32>
    %56 = vector.broadcast %7 : vector<1x512xf32> to vector<2x512xf32>
    %57 = arith.addf %55, %56 : vector<2x512xf32>
    %cst_10 = arith.constant dense<0.000000e+00> : vector<2x512xf32>
    %58 = tpu.matmul %46, %0, %cst_10 {dimension_numbers = #tpu.dot_dimension_numbers<[1], [0], [0], [1], [0, 0, 1, 1], [], []>} : vector<2x128xf32>, vector<128x512xf32>, vector<2x512xf32> -> vector<2x512xf32>
    %59 = arith.addf %57, %58 : vector<2x512xf32>
    %60 = vector.extract_strided_slice %59 {offsets = [0, 0], sizes = [2, 256], strides = [1, 1]} : vector<2x512xf32> to vector<2x256xf32>
    %61 = arith.negf %60 : vector<2x256xf32>
    %62 = math.exp %61 : vector<2x256xf32>
    %cst_11 = arith.constant 1.000000e+00 : f32
    %63 = vector.broadcast %cst_11 : f32 to vector<2x256xf32>
    %64 = arith.addf %63, %62 : vector<2x256xf32>
    %65 = arith.divf %63, %64 : vector<2x256xf32>
    %66 = vector.extract_strided_slice %65 {offsets = [0, 0], sizes = [2, 128], strides = [1, 1]} : vector<2x256xf32> to vector<2x128xf32>
    %67 = vector.extract_strided_slice %65 {offsets = [0, 128], sizes = [2, 128], strides = [1, 1]} : vector<2x256xf32> to vector<2x128xf32>
    %68 = vector.extract_strided_slice %59 {offsets = [0, 256], sizes = [2, 128], strides = [1, 1]} : vector<2x512xf32> to vector<2x128xf32>
    %69 = math.tanh %68 : vector<2x128xf32>
    %70 = vector.extract_strided_slice %59 {offsets = [0, 384], sizes = [2, 128], strides = [1, 1]} : vector<2x512xf32> to vector<2x128xf32>
    %71 = arith.negf %70 : vector<2x128xf32>
    %72 = math.exp %71 : vector<2x128xf32>
    %cst_12 = arith.constant 1.000000e+00 : f32
    %73 = vector.broadcast %cst_12 : f32 to vector<2x128xf32>
    %74 = arith.addf %73, %72 : vector<2x128xf32>
    %75 = arith.divf %73, %74 : vector<2x128xf32>
    %76 = arith.mulf %67, %44 : vector<2x128xf32>
    %77 = arith.mulf %66, %69 : vector<2x128xf32>
    %78 = arith.addf %76, %77 : vector<2x128xf32>
    %79 = math.tanh %78 : vector<2x128xf32>
    %80 = arith.mulf %75, %79 : vector<2x128xf32>
    %81 = vector.extract_strided_slice %10 {offsets = [0, 4], sizes = [2, 1], strides = [1, 1]} : vector<2x16xf32> to vector<2x1xf32>
    %82 = vector.broadcast %81 : vector<2x1xf32> to vector<2x512xf32>
    %83 = vector.broadcast %4 : vector<1x512xf32> to vector<2x512xf32>
    %84 = arith.mulf %82, %83 : vector<2x512xf32>
    %85 = vector.extract_strided_slice %10 {offsets = [0, 5], sizes = [2, 1], strides = [1, 1]} : vector<2x16xf32> to vector<2x1xf32>
    %86 = vector.broadcast %85 : vector<2x1xf32> to vector<2x512xf32>
    %87 = vector.broadcast %5 : vector<1x512xf32> to vector<2x512xf32>
    %88 = arith.mulf %86, %87 : vector<2x512xf32>
    %89 = arith.addf %84, %88 : vector<2x512xf32>
    %90 = vector.broadcast %7 : vector<1x512xf32> to vector<2x512xf32>
    %91 = arith.addf %89, %90 : vector<2x512xf32>
    %cst_13 = arith.constant dense<0.000000e+00> : vector<2x512xf32>
    %92 = tpu.matmul %80, %0, %cst_13 {dimension_numbers = #tpu.dot_dimension_numbers<[1], [0], [0], [1], [0, 0, 1, 1], [], []>} : vector<2x128xf32>, vector<128x512xf32>, vector<2x512xf32> -> vector<2x512xf32>
    %93 = arith.addf %91, %92 : vector<2x512xf32>
    %94 = vector.extract_strided_slice %93 {offsets = [0, 0], sizes = [2, 256], strides = [1, 1]} : vector<2x512xf32> to vector<2x256xf32>
    %95 = arith.negf %94 : vector<2x256xf32>
    %96 = math.exp %95 : vector<2x256xf32>
    %cst_14 = arith.constant 1.000000e+00 : f32
    %97 = vector.broadcast %cst_14 : f32 to vector<2x256xf32>
    %98 = arith.addf %97, %96 : vector<2x256xf32>
    %99 = arith.divf %97, %98 : vector<2x256xf32>
    %100 = vector.extract_strided_slice %99 {offsets = [0, 0], sizes = [2, 128], strides = [1, 1]} : vector<2x256xf32> to vector<2x128xf32>
    %101 = vector.extract_strided_slice %99 {offsets = [0, 128], sizes = [2, 128], strides = [1, 1]} : vector<2x256xf32> to vector<2x128xf32>
    %102 = vector.extract_strided_slice %93 {offsets = [0, 256], sizes = [2, 128], strides = [1, 1]} : vector<2x512xf32> to vector<2x128xf32>
    %103 = math.tanh %102 : vector<2x128xf32>
    %104 = vector.extract_strided_slice %93 {offsets = [0, 384], sizes = [2, 128], strides = [1, 1]} : vector<2x512xf32> to vector<2x128xf32>
    %105 = arith.negf %104 : vector<2x128xf32>
    %106 = math.exp %105 : vector<2x128xf32>
    %cst_15 = arith.constant 1.000000e+00 : f32
    %107 = vector.broadcast %cst_15 : f32 to vector<2x128xf32>
    %108 = arith.addf %107, %106 : vector<2x128xf32>
    %109 = arith.divf %107, %108 : vector<2x128xf32>
    %110 = arith.mulf %101, %78 : vector<2x128xf32>
    %111 = arith.mulf %100, %103 : vector<2x128xf32>
    %112 = arith.addf %110, %111 : vector<2x128xf32>
    %113 = math.tanh %112 : vector<2x128xf32>
    %114 = arith.mulf %109, %113 : vector<2x128xf32>
    %115 = vector.extract_strided_slice %10 {offsets = [0, 6], sizes = [2, 1], strides = [1, 1]} : vector<2x16xf32> to vector<2x1xf32>
    %116 = vector.broadcast %115 : vector<2x1xf32> to vector<2x512xf32>
    %117 = vector.broadcast %4 : vector<1x512xf32> to vector<2x512xf32>
    %118 = arith.mulf %116, %117 : vector<2x512xf32>
    %119 = vector.extract_strided_slice %10 {offsets = [0, 7], sizes = [2, 1], strides = [1, 1]} : vector<2x16xf32> to vector<2x1xf32>
    %120 = vector.broadcast %119 : vector<2x1xf32> to vector<2x512xf32>
    %121 = vector.broadcast %5 : vector<1x512xf32> to vector<2x512xf32>
    %122 = arith.mulf %120, %121 : vector<2x512xf32>
    %123 = arith.addf %118, %122 : vector<2x512xf32>
    %124 = vector.broadcast %7 : vector<1x512xf32> to vector<2x512xf32>
    %125 = arith.addf %123, %124 : vector<2x512xf32>
    %cst_16 = arith.constant dense<0.000000e+00> : vector<2x512xf32>
    %126 = tpu.matmul %114, %0, %cst_16 {dimension_numbers = #tpu.dot_dimension_numbers<[1], [0], [0], [1], [0, 0, 1, 1], [], []>} : vector<2x128xf32>, vector<128x512xf32>, vector<2x512xf32> -> vector<2x512xf32>
    %127 = arith.addf %125, %126 : vector<2x512xf32>
    %128 = vector.extract_strided_slice %127 {offsets = [0, 0], sizes = [2, 256], strides = [1, 1]} : vector<2x512xf32> to vector<2x256xf32>
    %129 = arith.negf %128 : vector<2x256xf32>
    %130 = math.exp %129 : vector<2x256xf32>
    %cst_17 = arith.constant 1.000000e+00 : f32
    %131 = vector.broadcast %cst_17 : f32 to vector<2x256xf32>
    %132 = arith.addf %131, %130 : vector<2x256xf32>
    %133 = arith.divf %131, %132 : vector<2x256xf32>
    %134 = vector.extract_strided_slice %133 {offsets = [0, 0], sizes = [2, 128], strides = [1, 1]} : vector<2x256xf32> to vector<2x128xf32>
    %135 = vector.extract_strided_slice %133 {offsets = [0, 128], sizes = [2, 128], strides = [1, 1]} : vector<2x256xf32> to vector<2x128xf32>
    %136 = vector.extract_strided_slice %127 {offsets = [0, 256], sizes = [2, 128], strides = [1, 1]} : vector<2x512xf32> to vector<2x128xf32>
    %137 = math.tanh %136 : vector<2x128xf32>
    %138 = vector.extract_strided_slice %127 {offsets = [0, 384], sizes = [2, 128], strides = [1, 1]} : vector<2x512xf32> to vector<2x128xf32>
    %139 = arith.negf %138 : vector<2x128xf32>
    %140 = math.exp %139 : vector<2x128xf32>
    %cst_18 = arith.constant 1.000000e+00 : f32
    %141 = vector.broadcast %cst_18 : f32 to vector<2x128xf32>
    %142 = arith.addf %141, %140 : vector<2x128xf32>
    %143 = arith.divf %141, %142 : vector<2x128xf32>
    %144 = arith.mulf %135, %112 : vector<2x128xf32>
    %145 = arith.mulf %134, %137 : vector<2x128xf32>
    %146 = arith.addf %144, %145 : vector<2x128xf32>
    %147 = math.tanh %146 : vector<2x128xf32>
    %148 = arith.mulf %143, %147 : vector<2x128xf32>
    %149 = vector.extract_strided_slice %10 {offsets = [0, 8], sizes = [2, 1], strides = [1, 1]} : vector<2x16xf32> to vector<2x1xf32>
    %150 = vector.broadcast %149 : vector<2x1xf32> to vector<2x512xf32>
    %151 = vector.broadcast %4 : vector<1x512xf32> to vector<2x512xf32>
    %152 = arith.mulf %150, %151 : vector<2x512xf32>
    %153 = vector.extract_strided_slice %10 {offsets = [0, 9], sizes = [2, 1], strides = [1, 1]} : vector<2x16xf32> to vector<2x1xf32>
    %154 = vector.broadcast %153 : vector<2x1xf32> to vector<2x512xf32>
    %155 = vector.broadcast %5 : vector<1x512xf32> to vector<2x512xf32>
    %156 = arith.mulf %154, %155 : vector<2x512xf32>
    %157 = arith.addf %152, %156 : vector<2x512xf32>
    %158 = vector.broadcast %7 : vector<1x512xf32> to vector<2x512xf32>
    %159 = arith.addf %157, %158 : vector<2x512xf32>
    %cst_19 = arith.constant dense<0.000000e+00> : vector<2x512xf32>
    %160 = tpu.matmul %148, %0, %cst_19 {dimension_numbers = #tpu.dot_dimension_numbers<[1], [0], [0], [1], [0, 0, 1, 1], [], []>} : vector<2x128xf32>, vector<128x512xf32>, vector<2x512xf32> -> vector<2x512xf32>
    %161 = arith.addf %159, %160 : vector<2x512xf32>
    %162 = vector.extract_strided_slice %161 {offsets = [0, 0], sizes = [2, 256], strides = [1, 1]} : vector<2x512xf32> to vector<2x256xf32>
    %163 = arith.negf %162 : vector<2x256xf32>
    %164 = math.exp %163 : vector<2x256xf32>
    %cst_20 = arith.constant 1.000000e+00 : f32
    %165 = vector.broadcast %cst_20 : f32 to vector<2x256xf32>
    %166 = arith.addf %165, %164 : vector<2x256xf32>
    %167 = arith.divf %165, %166 : vector<2x256xf32>
    %168 = vector.extract_strided_slice %167 {offsets = [0, 0], sizes = [2, 128], strides = [1, 1]} : vector<2x256xf32> to vector<2x128xf32>
    %169 = vector.extract_strided_slice %167 {offsets = [0, 128], sizes = [2, 128], strides = [1, 1]} : vector<2x256xf32> to vector<2x128xf32>
    %170 = vector.extract_strided_slice %161 {offsets = [0, 256], sizes = [2, 128], strides = [1, 1]} : vector<2x512xf32> to vector<2x128xf32>
    %171 = math.tanh %170 : vector<2x128xf32>
    %172 = vector.extract_strided_slice %161 {offsets = [0, 384], sizes = [2, 128], strides = [1, 1]} : vector<2x512xf32> to vector<2x128xf32>
    %173 = arith.negf %172 : vector<2x128xf32>
    %174 = math.exp %173 : vector<2x128xf32>
    %cst_21 = arith.constant 1.000000e+00 : f32
    %175 = vector.broadcast %cst_21 : f32 to vector<2x128xf32>
    %176 = arith.addf %175, %174 : vector<2x128xf32>
    %177 = arith.divf %175, %176 : vector<2x128xf32>
    %178 = arith.mulf %169, %146 : vector<2x128xf32>
    %179 = arith.mulf %168, %171 : vector<2x128xf32>
    %180 = arith.addf %178, %179 : vector<2x128xf32>
    %181 = math.tanh %180 : vector<2x128xf32>
    %182 = arith.mulf %177, %181 : vector<2x128xf32>
    %183 = vector.extract_strided_slice %10 {offsets = [0, 10], sizes = [2, 1], strides = [1, 1]} : vector<2x16xf32> to vector<2x1xf32>
    %184 = vector.broadcast %183 : vector<2x1xf32> to vector<2x512xf32>
    %185 = vector.broadcast %4 : vector<1x512xf32> to vector<2x512xf32>
    %186 = arith.mulf %184, %185 : vector<2x512xf32>
    %187 = vector.extract_strided_slice %10 {offsets = [0, 11], sizes = [2, 1], strides = [1, 1]} : vector<2x16xf32> to vector<2x1xf32>
    %188 = vector.broadcast %187 : vector<2x1xf32> to vector<2x512xf32>
    %189 = vector.broadcast %5 : vector<1x512xf32> to vector<2x512xf32>
    %190 = arith.mulf %188, %189 : vector<2x512xf32>
    %191 = arith.addf %186, %190 : vector<2x512xf32>
    %192 = vector.broadcast %7 : vector<1x512xf32> to vector<2x512xf32>
    %193 = arith.addf %191, %192 : vector<2x512xf32>
    %cst_22 = arith.constant dense<0.000000e+00> : vector<2x512xf32>
    %194 = tpu.matmul %182, %0, %cst_22 {dimension_numbers = #tpu.dot_dimension_numbers<[1], [0], [0], [1], [0, 0, 1, 1], [], []>} : vector<2x128xf32>, vector<128x512xf32>, vector<2x512xf32> -> vector<2x512xf32>
    %195 = arith.addf %193, %194 : vector<2x512xf32>
    %196 = vector.extract_strided_slice %195 {offsets = [0, 0], sizes = [2, 256], strides = [1, 1]} : vector<2x512xf32> to vector<2x256xf32>
    %197 = arith.negf %196 : vector<2x256xf32>
    %198 = math.exp %197 : vector<2x256xf32>
    %cst_23 = arith.constant 1.000000e+00 : f32
    %199 = vector.broadcast %cst_23 : f32 to vector<2x256xf32>
    %200 = arith.addf %199, %198 : vector<2x256xf32>
    %201 = arith.divf %199, %200 : vector<2x256xf32>
    %202 = vector.extract_strided_slice %201 {offsets = [0, 0], sizes = [2, 128], strides = [1, 1]} : vector<2x256xf32> to vector<2x128xf32>
    %203 = vector.extract_strided_slice %201 {offsets = [0, 128], sizes = [2, 128], strides = [1, 1]} : vector<2x256xf32> to vector<2x128xf32>
    %204 = vector.extract_strided_slice %195 {offsets = [0, 256], sizes = [2, 128], strides = [1, 1]} : vector<2x512xf32> to vector<2x128xf32>
    %205 = math.tanh %204 : vector<2x128xf32>
    %206 = vector.extract_strided_slice %195 {offsets = [0, 384], sizes = [2, 128], strides = [1, 1]} : vector<2x512xf32> to vector<2x128xf32>
    %207 = arith.negf %206 : vector<2x128xf32>
    %208 = math.exp %207 : vector<2x128xf32>
    %cst_24 = arith.constant 1.000000e+00 : f32
    %209 = vector.broadcast %cst_24 : f32 to vector<2x128xf32>
    %210 = arith.addf %209, %208 : vector<2x128xf32>
    %211 = arith.divf %209, %210 : vector<2x128xf32>
    %212 = arith.mulf %203, %180 : vector<2x128xf32>
    %213 = arith.mulf %202, %205 : vector<2x128xf32>
    %214 = arith.addf %212, %213 : vector<2x128xf32>
    %215 = math.tanh %214 : vector<2x128xf32>
    %216 = arith.mulf %211, %215 : vector<2x128xf32>
    %217 = vector.extract_strided_slice %10 {offsets = [0, 12], sizes = [2, 1], strides = [1, 1]} : vector<2x16xf32> to vector<2x1xf32>
    %218 = vector.broadcast %217 : vector<2x1xf32> to vector<2x512xf32>
    %219 = vector.broadcast %4 : vector<1x512xf32> to vector<2x512xf32>
    %220 = arith.mulf %218, %219 : vector<2x512xf32>
    %221 = vector.extract_strided_slice %10 {offsets = [0, 13], sizes = [2, 1], strides = [1, 1]} : vector<2x16xf32> to vector<2x1xf32>
    %222 = vector.broadcast %221 : vector<2x1xf32> to vector<2x512xf32>
    %223 = vector.broadcast %5 : vector<1x512xf32> to vector<2x512xf32>
    %224 = arith.mulf %222, %223 : vector<2x512xf32>
    %225 = arith.addf %220, %224 : vector<2x512xf32>
    %226 = vector.broadcast %7 : vector<1x512xf32> to vector<2x512xf32>
    %227 = arith.addf %225, %226 : vector<2x512xf32>
    %cst_25 = arith.constant dense<0.000000e+00> : vector<2x512xf32>
    %228 = tpu.matmul %216, %0, %cst_25 {dimension_numbers = #tpu.dot_dimension_numbers<[1], [0], [0], [1], [0, 0, 1, 1], [], []>} : vector<2x128xf32>, vector<128x512xf32>, vector<2x512xf32> -> vector<2x512xf32>
    %229 = arith.addf %227, %228 : vector<2x512xf32>
    %230 = vector.extract_strided_slice %229 {offsets = [0, 0], sizes = [2, 256], strides = [1, 1]} : vector<2x512xf32> to vector<2x256xf32>
    %231 = arith.negf %230 : vector<2x256xf32>
    %232 = math.exp %231 : vector<2x256xf32>
    %cst_26 = arith.constant 1.000000e+00 : f32
    %233 = vector.broadcast %cst_26 : f32 to vector<2x256xf32>
    %234 = arith.addf %233, %232 : vector<2x256xf32>
    %235 = arith.divf %233, %234 : vector<2x256xf32>
    %236 = vector.extract_strided_slice %235 {offsets = [0, 0], sizes = [2, 128], strides = [1, 1]} : vector<2x256xf32> to vector<2x128xf32>
    %237 = vector.extract_strided_slice %235 {offsets = [0, 128], sizes = [2, 128], strides = [1, 1]} : vector<2x256xf32> to vector<2x128xf32>
    %238 = vector.extract_strided_slice %229 {offsets = [0, 256], sizes = [2, 128], strides = [1, 1]} : vector<2x512xf32> to vector<2x128xf32>
    %239 = math.tanh %238 : vector<2x128xf32>
    %240 = vector.extract_strided_slice %229 {offsets = [0, 384], sizes = [2, 128], strides = [1, 1]} : vector<2x512xf32> to vector<2x128xf32>
    %241 = arith.negf %240 : vector<2x128xf32>
    %242 = math.exp %241 : vector<2x128xf32>
    %cst_27 = arith.constant 1.000000e+00 : f32
    %243 = vector.broadcast %cst_27 : f32 to vector<2x128xf32>
    %244 = arith.addf %243, %242 : vector<2x128xf32>
    %245 = arith.divf %243, %244 : vector<2x128xf32>
    %246 = arith.mulf %237, %214 : vector<2x128xf32>
    %247 = arith.mulf %236, %239 : vector<2x128xf32>
    %248 = arith.addf %246, %247 : vector<2x128xf32>
    %249 = math.tanh %248 : vector<2x128xf32>
    %250 = arith.mulf %245, %249 : vector<2x128xf32>
    %251 = vector.extract_strided_slice %10 {offsets = [0, 14], sizes = [2, 1], strides = [1, 1]} : vector<2x16xf32> to vector<2x1xf32>
    %252 = vector.broadcast %251 : vector<2x1xf32> to vector<2x512xf32>
    %253 = vector.broadcast %4 : vector<1x512xf32> to vector<2x512xf32>
    %254 = arith.mulf %252, %253 : vector<2x512xf32>
    %255 = vector.extract_strided_slice %10 {offsets = [0, 15], sizes = [2, 1], strides = [1, 1]} : vector<2x16xf32> to vector<2x1xf32>
    %256 = vector.broadcast %255 : vector<2x1xf32> to vector<2x512xf32>
    %257 = vector.broadcast %5 : vector<1x512xf32> to vector<2x512xf32>
    %258 = arith.mulf %256, %257 : vector<2x512xf32>
    %259 = arith.addf %254, %258 : vector<2x512xf32>
    %260 = vector.broadcast %7 : vector<1x512xf32> to vector<2x512xf32>
    %261 = arith.addf %259, %260 : vector<2x512xf32>
    %cst_28 = arith.constant dense<0.000000e+00> : vector<2x512xf32>
    %262 = tpu.matmul %250, %0, %cst_28 {dimension_numbers = #tpu.dot_dimension_numbers<[1], [0], [0], [1], [0, 0, 1, 1], [], []>} : vector<2x128xf32>, vector<128x512xf32>, vector<2x512xf32> -> vector<2x512xf32>
    %263 = arith.addf %261, %262 : vector<2x512xf32>
    %264 = vector.extract_strided_slice %263 {offsets = [0, 0], sizes = [2, 256], strides = [1, 1]} : vector<2x512xf32> to vector<2x256xf32>
    %265 = arith.negf %264 : vector<2x256xf32>
    %266 = math.exp %265 : vector<2x256xf32>
    %cst_29 = arith.constant 1.000000e+00 : f32
    %267 = vector.broadcast %cst_29 : f32 to vector<2x256xf32>
    %268 = arith.addf %267, %266 : vector<2x256xf32>
    %269 = arith.divf %267, %268 : vector<2x256xf32>
    %270 = vector.extract_strided_slice %269 {offsets = [0, 0], sizes = [2, 128], strides = [1, 1]} : vector<2x256xf32> to vector<2x128xf32>
    %271 = vector.extract_strided_slice %269 {offsets = [0, 128], sizes = [2, 128], strides = [1, 1]} : vector<2x256xf32> to vector<2x128xf32>
    %272 = vector.extract_strided_slice %263 {offsets = [0, 256], sizes = [2, 128], strides = [1, 1]} : vector<2x512xf32> to vector<2x128xf32>
    %273 = math.tanh %272 : vector<2x128xf32>
    %274 = vector.extract_strided_slice %263 {offsets = [0, 384], sizes = [2, 128], strides = [1, 1]} : vector<2x512xf32> to vector<2x128xf32>
    %275 = arith.negf %274 : vector<2x128xf32>
    %276 = math.exp %275 : vector<2x128xf32>
    %cst_30 = arith.constant 1.000000e+00 : f32
    %277 = vector.broadcast %cst_30 : f32 to vector<2x128xf32>
    %278 = arith.addf %277, %276 : vector<2x128xf32>
    %279 = arith.divf %277, %278 : vector<2x128xf32>
    %280 = arith.mulf %271, %248 : vector<2x128xf32>
    %281 = arith.mulf %270, %273 : vector<2x128xf32>
    %282 = arith.addf %280, %281 : vector<2x128xf32>
    %283 = math.tanh %282 : vector<2x128xf32>
    %284 = arith.mulf %279, %283 : vector<2x128xf32>
    %cst_31 = arith.constant dense<0.000000e+00> : vector<2x128xf32>
    %285 = tpu.matmul %284, %1, %cst_31 {dimension_numbers = #tpu.dot_dimension_numbers<[1], [0], [0], [1], [0, 0, 1, 1], [], []>} : vector<2x128xf32>, vector<128x128xf32>, vector<2x128xf32> -> vector<2x128xf32>
    %286 = vector.broadcast %8 : vector<1x128xf32> to vector<2x128xf32>
    %287 = arith.addf %285, %286 : vector<2x128xf32>
    %cst_32 = arith.constant 0.000000e+00 : f32
    %288 = vector.broadcast %cst_32 : f32 to vector<2x128xf32>
    %289 = arith.maximumf %287, %288 : vector<2x128xf32>
    %cst_33 = arith.constant dense<0.000000e+00> : vector<2x128xf32>
    %290 = tpu.matmul %289, %2, %cst_33 {dimension_numbers = #tpu.dot_dimension_numbers<[1], [0], [0], [1], [0, 0, 1, 1], [], []>} : vector<2x128xf32>, vector<128x128xf32>, vector<2x128xf32> -> vector<2x128xf32>
    %291 = vector.broadcast %9 : vector<1x128xf32> to vector<2x128xf32>
    %292 = arith.addf %290, %291 : vector<2x128xf32>
    %c0_34 = arith.constant 0 : index
    %c0_35 = arith.constant 0 : index
    %293 = vector.load %arg2[%c0_34, %c0_35] : memref<2x128xf32, #tpu.memory_space<vmem>>, vector<2x128xf32>
    tpu.vector_store %arg2[%c0_34, %c0_35], %292 {strides = array<i32>} : memref<2x128xf32, #tpu.memory_space<vmem>>, vector<2x128xf32>,
    return
  }
}

</mosaic_0001>

<bundles_post_ra>
// kernel: tpu_custom_call.1
= control target key start
LH: loop header
LB: loop body
LE: loop exit
PB: predicated region body
PF: predicated region fallthrough
CT: control target
= control target key end

     0   :  { %7 = vsyncpa [#allocation3], 0  ;;  %s3452_s0 = inlined_call_operand.hbm [shape: f32[2,16], index: 0, kind: input, shape index: {}]   ;;  %s3453_s1 = inlined_call_operand.hbm [shape: f32[136,768], index: 1, kind: input, shape index: {}]   ;;  %s3454_s2 = inlined_call_operand.hbm [shape: f32[2,128], index: 2, kind: output, shape index: {}]  }
   0x1   :  { %8 = vsyncpa [#allocation6], 0 }
   0x2   :  { %9 = vsyncpa [#allocation4], 0  ;;  %s2838_s9 = smov [#allocation2]   ;;  %s2839_s11 = smov [#allocation5]  }
   0x3   :  { %s16_s10 = sshll.u32 %s2838_s9, 4  ;;  %s25_s12 = sshll.u32 %s2839_s11, 4  ;;  %s17_s10 = int_to_ptr.vmem [resolvable:$true] %s16_s10  ;;  %s2877_s12 = int_to_ptr.vmem [resolvable:$true] %s25_s12 }
   0x4   :  { %s2766_s15 = scalar_lea.hbm %s3452_s0, 32 }
   0x5   :  { %p2767_p0 = scmp.ne.s32.totalorder %s3452_s0, %s2766_s15  ;;  %p2770_p1 = scmp.lt.u32.totalorder %s2766_s15, %s3452_s0 }
   0x7   :  { %p2772_p2 = pnand %p2770_p1, %p2767_p0 }
   0x9   :  { %2775 = shalt.err (!%p2772_p2)
}
   0xa   :  { %s2776_s20 = scalar_lea.vmem %s17_s10, 32  ;;  %p2781_p4 = scmp.lt.s32.totalorder %s17_s10, %s17_s10 }
   0xb   :  { %p2777_p3 = scmp.ne.s32.totalorder %s17_s10, %s2776_s20  ;;  %p2782_p5 = scmp.lt.s32.totalorder %s2776_s20, %s2776_s20 }
   0xd   :  { %p2783_p6 = por %p2782_p5, %p2781_p4 }
   0xf   :  { %p2784_p7 = pnand %p2783_p6, %p2777_p3 }
  0x11   :  { %2787 = shalt.err (!%p2784_p7)
}
  0x12   :  { %19 = dma.hbm_to_vmem [thread:$0]  %s3452_s0, 32, %s17_s10, [#allocation3]  }
  0x13   :  { %s2788_s25 = scalar_lea.hbm %s3453_s1, 13056 }
  0x14   :  { %p2789_p8 = scmp.ne.s32.totalorder %s3453_s1, %s2788_s25  ;;  %p2792_p9 = scmp.lt.u32.totalorder %s2788_s25, %s3453_s1 }
  0x16   :  { %p2794_p10 = pnand %p2792_p9, %p2789_p8 }
  0x18   :  { %2797 = shalt.err (!%p2794_p10)
}
  0x19   :  { %s2798_s30 = scalar_lea.vmem %s2877_s12, 13056  ;;  %p2803_p12 = scmp.lt.s32.totalorder %s2877_s12, %s2877_s12 }
  0x1a   :  { %p2799_p11 = scmp.ne.s32.totalorder %s2877_s12, %s2798_s30  ;;  %p2804_p13 = scmp.lt.s32.totalorder %s2798_s30, %s2798_s30 }
  0x1c   :  { %p2805_p0 = por %p2804_p13, %p2803_p12 }
  0x1e   :  { %p2806_p1 = pnand %p2805_p0, %p2799_p11 }
  0x20   :  { %2809 = shalt.err (!%p2806_p1)
}
  0x21   :  { %s2840_s0 = smov 768   ;;  %s2841_s3 = smov 48  }
  0x22   :  { %31 = dma.hbm_to_vmem [thread:$0]  %s3453_s1, 13056, %s2877_s12, [#allocation6], %s2840_s0, %s2840_s0, %s2841_s3  }
  0x23   :  { %2832 = dma.done.wait [#allocation3], 32  }
  0x24   :  { %2833 = vsyncadd [#allocation3], 4294967264 }
  0x25   :  { %2834 = dma.done.wait [#allocation6], 13056  }
  0x26   :  { %2835 = vsyncadd [#allocation6], 4294954240  ;;  %v3455_v0 = vmov 0.0   ;;  %v2843_v1 = vmov 0   ;;  %v39_v2 = vld [vmem:[#allocation5 + $0x8] sm:$0xff]  ;;  %v43_v3 = vld [vmem:[#allocation5 + $0x38] sm:$0xff] }
  0x27   :  { %278 = vmatprep.mubr.f32.mxu0 %v3455_v0  ;;  %349 = vmatprep.mubr.f32.mxu1 %v3455_v0  ;;  %v41_v4 = vld [vmem:[#allocation5 + $0x18] sm:$0xff]  ;;  %v2910_v5 = vpack.c.bf16 %v43_v3, %v39_v2  ;;  %v45_v6 = vld [vmem:[#allocation5 + $0x48] sm:$0xff]  ;;  %v38_v7 = vld [vmem:[#allocation5] sm:$0xff]  ;;  %vm2860_vm0 = vmmov 0   ;;  %s2861_s1 = smov [#allocation7]  }
  0x28   :  { %2620 = vset.pattern.permute.xlu0 %v2843_v1  ;;  %v42_v8 = vld [vmem:[#allocation5 + $0x30] sm:$0xff]  ;;  %v2912_v9 = vpack.c.bf16 %v45_v6, %v41_v4  ;;  %v44_v12 = vld [vmem:[#allocation5 + $0x40] sm:$0xff]  ;;  %v47_v13 = vld [vmem:[#allocation5 + $0x68] sm:$0xff]  ;;  %s1898_s6 = sshll.u32 %s2861_s1, 4  ;;  %s1899_s6 = int_to_ptr.vmem [resolvable:$true] %s1898_s6 }
  0x29   :  { %v2914_v10 = vpack.c.bf16 %v42_v8, %v38_v7  ;;  %v40_v11 = vld [vmem:[#allocation5 + $0x10] sm:$0xff]  ;;  %2037 = vmatprep.subr.bf16.mxu0 %v2910_v5  ;;  %v51_v15 = vld [vmem:[#allocation5 + $0x98] sm:$0xff]  ;;  %v53_v17 = vld [vmem:[#allocation5 + $0xa8] sm:$0xff]  ;;  %s2810_s7 = scalar_lea.vmem %s1899_s6, 32  ;;  %p2815_p3 = scmp.lt.s32.totalorder %s1899_s6, %s1899_s6 }
  0x2a   :  { %v2917_v14 = vpack.c.bf16 %v44_v12, %v40_v11  ;;  %v49_v16 = vld [vmem:[#allocation5 + $0x78] sm:$0xff]  ;;  %2069 = vmatprep.subr.bf16.mxu1 %v2912_v9  ;;  %v2921_v18 = vpack.c.bf16 %v51_v15, %v47_v13  ;;  %v46_v20 = vld [vmem:[#allocation5 + $0x60] sm:$0xff]  ;;  %v50_v21 = vld [vmem:[#allocation5 + $0x90] sm:$0xff]  ;;  %p2811_p2 = scmp.ne.s32.totalorder %s1899_s6, %s2810_s7  ;;  %p2816_p4 = scmp.lt.s32.totalorder %s2810_s7, %s2810_s7 }
  0x2b   :  { %2039 = vmatpush1.bf16.msra.mxu0 %v2914_v10  ;;  %v2923_v19 = vpack.c.bf16 %v53_v17, %v49_v16  ;;  %v48_v22 = vld [vmem:[#allocation5 + $0x70] sm:$0xff]  ;;  %v2926_v23 = vpack.c.bf16 %v50_v21, %v46_v20  ;;  %v52_v24 = vld [vmem:[#allocation5 + $0xa0] sm:$0xff]  ;;  %v55_v25 = vld [vmem:[#allocation5 + $0xc8] sm:$0xff] }
  0x2c   :  { %2071 = vmatpush1.bf16.msra.mxu1 %v2917_v14  ;;  %v59_v26 = vld [vmem:[#allocation5 + $0xf8] sm:$0xff]  ;;  %2041 = vmatprep.subr.bf16.mxu0 %v2921_v18  ;;  %v2930_v27 = vpack.c.bf16 %v52_v24, %v48_v22  ;;  %v61_v30 = vld [vmem:[#allocation5 + $0x108] sm:$0xff]  ;;  %v54_v31 = vld [vmem:[#allocation5 + $0xc0] sm:$0xff]  ;;  %p2817_p5 = por %p2816_p4, %p2815_p3 }
  0x2d   :  { %2073 = vmatprep.subr.bf16.mxu1 %v2923_v19  ;;  %v2932_v28 = vpack.c.bf16 %v59_v26, %v55_v25  ;;  %v57_v29 = vld [vmem:[#allocation5 + $0xd8] sm:$0xff]  ;;  %v58_v33 = vld [vmem:[#allocation5 + $0xf0] sm:$0xff]  ;;  %v60_v35 = vld [vmem:[#allocation5 + $0x100] sm:$0xff] }
  0x2e   :  { %v2934_v32 = vpack.c.bf16 %v61_v30, %v57_v29  ;;  %v56_v34 = vld [vmem:[#allocation5 + $0xd0] sm:$0xff]  ;;  %v2937_v36 = vpack.c.bf16 %v58_v33, %v54_v31  ;;  %v63_v37 = vld [vmem:[#allocation5 + $0x128] sm:$0xff]  ;;  %v67_v38 = vld [vmem:[#allocation5 + $0x158] sm:$0xff]  ;;  %p2818_p6 = pnand %p2817_p5, %p2811_p2 }
  0x2f   :  { %2043 = vmatpush1.bf16.msra.mxu0 %v2926_v23  ;;  %v65_v39 = vld [vmem:[#allocation5 + $0x138] sm:$0xff]  ;;  %v2941_v40 = vpack.c.bf16 %v60_v35, %v56_v34  ;;  %v2943_v41 = vpack.c.bf16 %v67_v38, %v63_v37  ;;  %v69_v42 = vld [vmem:[#allocation5 + $0x168] sm:$0xff]  ;;  %v62_v43 = vld [vmem:[#allocation5 + $0x120] sm:$0xff] }
  0x30   :  { %2075 = vmatpush1.bf16.msra.mxu1 %v2930_v27  ;;  %2045 = vmatprep.subr.bf16.mxu0 %v2932_v28  ;;  %v66_v44 = vld [vmem:[#allocation5 + $0x150] sm:$0xff]  ;;  %v2946_v45 = vpack.c.bf16 %v69_v42, %v65_v39  ;;  %v68_v47 = vld [vmem:[#allocation5 + $0x160] sm:$0xff]  ;;  %v71_v48 = vld [vmem:[#allocation5 + $0x188] sm:$0xff] }
  0x31   :  { %2077 = vmatprep.subr.bf16.mxu1 %v2934_v32  ;;  %v64_v46 = vld [vmem:[#allocation5 + $0x130] sm:$0xff]  ;;  %v75_v49 = vld [vmem:[#allocation5 + $0x1b8] sm:$0xff]  ;;  %v77_v51 = vld [vmem:[#allocation5 + $0x1c8] sm:$0xff]  ;;  %v2949_v52 = vpack.c.bf16 %v66_v44, %v62_v43 }
  0x32   :  { %v73_v50 = vld [vmem:[#allocation5 + $0x198] sm:$0xff]  ;;  %v2953_v53 = vpack.c.bf16 %v68_v47, %v64_v46  ;;  %v2955_v54 = vpack.c.bf16 %v75_v49, %v71_v48  ;;  %v70_v55 = vld [vmem:[#allocation5 + $0x180] sm:$0xff]  ;;  %v74_v56 = vld [vmem:[#allocation5 + $0x1b0] sm:$0xff]  ;;  %v2844_v48 = vmov 1  }
  0x33   :  { %2047 = vmatpush1.bf16.msra.mxu0 %v2937_v36  ;;  %v72_v57 = vld [vmem:[#allocation5 + $0x190] sm:$0xff]  ;;  %v2958_v58 = vpack.c.bf16 %v77_v51, %v73_v50  ;;  %v76_v59 = vld [vmem:[#allocation5 + $0x1c0] sm:$0xff]  ;;  %v79_v60 = vld [vmem:[#allocation5 + $0x1e8] sm:$0xff]  ;;  %v2961_v1 = vpack.c.bf16 %v74_v56, %v70_v55  ;;  %v2845_v51 = vmov 2   ;;  %v2846_v55 = vmov 3  }
  0x34   :  { %2079 = vmatpush1.bf16.msra.mxu1 %v2941_v40  ;;  %2049 = vmatprep.subr.bf16.mxu0 %v2943_v41  ;;  %v83_v61 = vld [vmem:[#allocation5 + $0x218] sm:$0xff]  ;;  %v85_v63 = vld [vmem:[#allocation5 + $0x228] sm:$0xff]  ;;  %v2965_v2 = vpack.c.bf16 %v76_v59, %v72_v57  ;;  %v78_v4 = vld [vmem:[#allocation5 + $0x1e0] sm:$0xff]  ;;  %v146_v56 = vlaneseq }
  0x35   :  { %2081 = vmatprep.subr.bf16.mxu1 %v2946_v45  ;;  %v81_v62 = vld [vmem:[#allocation5 + $0x1f8] sm:$0xff]  ;;  %v2967_v3 = vpack.c.bf16 %v83_v61, %v79_v60  ;;  %v82_v6 = vld [vmem:[#allocation5 + $0x210] sm:$0xff]  ;;  %v84_v11 = vld [vmem:[#allocation5 + $0x220] sm:$0xff]  ;;  %2622 = vset.pattern.permute.xlu1 %v2845_v51 }
  0x36   :  { %v80_v7 = vld [vmem:[#allocation5 + $0x1f0] sm:$0xff]  ;;  %v2970_v8 = vpack.c.bf16 %v85_v63, %v81_v62  ;;  %v87_v12 = vld [vmem:[#allocation5 + $0x248] sm:$0xff]  ;;  %v91_v13 = vld [vmem:[#allocation5 + $0x278] sm:$0xff]  ;;  %v2973_v17 = vpack.c.bf16 %v82_v6, %v78_v4  ;;  %v147_v57 = vshrl.u32 %v146_v56, 7 }
  0x37   :  { %2051 = vmatpush1.bf16.msra.mxu0 %v2949_v52  ;;  %v89_v15 = vld [vmem:[#allocation5 + $0x258] sm:$0xff]  ;;  %v93_v16 = vld [vmem:[#allocation5 + $0x288] sm:$0xff]  ;;  %v86_v20 = vld [vmem:[#allocation5 + $0x240] sm:$0xff]  ;;  %v2977_v21 = vpack.c.bf16 %v84_v11, %v80_v7  ;;  %v2979_v22 = vpack.c.bf16 %v91_v13, %v87_v12 }
  0x38   :  { %2083 = vmatpush1.bf16.msra.mxu1 %v2953_v53  ;;  %2053 = vmatprep.subr.bf16.mxu0 %v2955_v54  ;;  %v90_v24 = vld [vmem:[#allocation5 + $0x270] sm:$0xff]  ;;  %v2981_v26 = vld [vmem:[#allocation2] sm:$0x3]  ;;  %v2984_v29 = vpack.c.bf16 %v93_v16, %v89_v15  ;;  %v92_v30 = vld [vmem:[#allocation5 + $0x280] sm:$0xff]  ;;  %v148_v60 = vsub.s32 0, %v147_v57  ;;  %v172_v61 = vsub.s32 1, %v147_v57 }
  0x39   :  { %2085 = vmatprep.subr.bf16.mxu1 %v2958_v58  ;;  %v88_v25 = vld [vmem:[#allocation5 + $0x250] sm:$0xff]  ;;  %v95_v31 = vld [vmem:[#allocation5 + $0x2a8] sm:$0xff]  ;;  %v99_v33 = vld [vmem:[#allocation5 + $0x2d8] sm:$0xff]  ;;  %143 = vperm.xlu0 %2620, %v2981_v26   ;;  %v2988_v37 = vpack.c.bf16 %v90_v24, %v86_v20  ;;  %v3060_v20 = vsub.s32 2, %v147_v57 }
  0x3a   :  { %v97_v34 = vld [vmem:[#allocation5 + $0x2b8] sm:$0xff]  ;;  %v101_v35 = vld [vmem:[#allocation5 + $0x2e8] sm:$0xff]  ;;  %v2992_v38 = vpack.c.bf16 %v92_v30, %v88_v25  ;;  %v2994_v39 = vpack.c.bf16 %v99_v33, %v95_v31  ;;  %v94_v42 = vld [vmem:[#allocation5 + $0x2a0] sm:$0xff]  ;;  %385 = vperm.xlu1 %2622, %v2981_v26  }
  0x3b   :  { %2055 = vmatpush1.bf16.msra.mxu0 %v2961_v1  ;;  %v98_v43 = vld [vmem:[#allocation5 + $0x2d0] sm:$0xff]  ;;  %v2997_v44 = vpack.c.bf16 %v101_v35, %v97_v34  ;;  %v100_v47 = vld [vmem:[#allocation5 + $0x2e0] sm:$0xff]  ;;  %v135_v63 = vld [vmem:[#allocation5 + $0x308] sm:$0xff]  ;;  %3489 = vst [vmem:[#allocation15_spill] sm:$0xff] %v3060_v20 }
  0x3c   :  { %2087 = vmatpush1.bf16.msra.mxu1 %v2965_v2  ;;  %2057 = vmatprep.subr.bf16.mxu0 %v2967_v3  ;;  %v96_v46 = vld [vmem:[#allocation5 + $0x2b0] sm:$0xff]  ;;  %v3001_v49 = vpack.c.bf16 %v98_v43, %v94_v42  ;;  %v134_v62 = vld [vmem:[#allocation5 + $0x300] sm:$0xff]  ;;  %v3054_v7 = vrot.slane %v135_v63, %v148_v60  ;;  %v3056_v12 = vrot.slane %v135_v63, %v172_v61  ;;  %v137_v13 = vld [vmem:[#allocation5 + $0x318] sm:$0xff] }
  0x3d   :  { %2089 = vmatprep.subr.bf16.mxu1 %v2970_v8  ;;  %2621 = vset.pattern.permute.xlu0 %v2844_v48  ;;  %v3005_v50 = vpack.c.bf16 %v100_v47, %v96_v46  ;;  %v3050_v4 = vrot.slane %v134_v62, %v148_v60  ;;  %v3052_v6 = vrot.slane %v134_v62, %v172_v61  ;;  %v136_v35 = vld [vmem:[#allocation5 + $0x310] sm:$0xff] }
  0x3e   :  { %167 = vperm.xlu0 %2621, %v2981_v26   ;;  %2623 = vset.pattern.permute.xlu1 %v2846_v55  ;;  %3487 = vst [vmem:[#allocation13_spill] sm:$0xff] %v3054_v7  ;;  %3488 = vst [vmem:[#allocation14_spill] sm:$0xff] %v3056_v12  ;;  %v3064_v30 = vrot.slane %v137_v13, %v148_v60  ;;  %v3066_v31 = vrot.slane %v137_v13, %v172_v61 }
  0x3f   :  { %2059 = vmatpush1.bf16.msra.mxu0 %v2973_v17  ;;  %393 = vperm.xlu1 %2623, %v2981_v26   ;;  %3485 = vst [vmem:[#allocation11_spill] sm:$0xff] %v3050_v4  ;;  %3486 = vst [vmem:[#allocation12_spill] sm:$0xff] %v3052_v6  ;;  %v3069_v34 = vrot.slane %v134_v62, %v3060_v20  ;;  %v3072_v43 = vrot.slane %v135_v63, %v3060_v20 }
  0x40   :  { %2091 = vmatpush1.bf16.msra.mxu1 %v2977_v21  ;;  %2061 = vmatprep.subr.bf16.mxu0 %v2979_v22  ;;  %3490 = vst [vmem:[#allocation16_spill] sm:$0xff] %v3064_v30  ;;  %3491 = vst [vmem:[#allocation17_spill] sm:$0xff] %v3066_v31  ;;  %v3076_v48 = vrot.slane %v136_v35, %v148_v60  ;;  %v3078_v51 = vrot.slane %v136_v35, %v172_v61 }
  0x41   :  { %2093 = vmatprep.subr.bf16.mxu1 %v2984_v29  ;;  %3492 = vst [vmem:[#allocation18_spill] sm:$0xff] %v3069_v34  ;;  %3493 = vst [vmem:[#allocation19_spill] sm:$0xff] %v3072_v43  ;;  %v3083_v63 = vrot.slane %v137_v13, %v3060_v20 }
  0x42   :  { %3494 = vst [vmem:[#allocation20_spill] sm:$0xff] %v3076_v48  ;;  %3495 = vst [vmem:[#allocation21_spill] sm:$0xff] %v3078_v51 }
  0x43   :  { %2063 = vmatpush1.bf16.msra.mxu0 %v2988_v37 }
  0x44   :  { %2095 = vmatpush1.bf16.msra.mxu1 %v2992_v38  ;;  %2065 = vmatprep.subr.bf16.mxu0 %v2994_v39 }
  0x45   :  { %2097 = vmatprep.subr.bf16.mxu1 %v2997_v44 }
  0x47   :  { %2067 = vmatpush1.bf16.msra.mxu0 %v3001_v49 }
  0x48   :  { %2099 = vmatpush1.bf16.msra.mxu1 %v3005_v50  ;;  %2101 = vmatprep.subr.bf16.mxu0 %v2910_v5 }
  0x49   :  { %2133 = vmatprep.subr.bf16.mxu1 %v2912_v9 }
  0x4a   :  { %279 = vmatmul.mubr.f32.vlgmr.msra.gmra.mrb[0].mxu0 %v3455_v0 }
  0x4b   :  { %350 = vmatmul.mubr.f32.vlgmr.msra.gmra.mrb[0].mxu1 %v3455_v0  ;;  %2103 = vmatpush1.bf16.msra.mxu0 %v2914_v10 }
  0x4c   :  { %2135 = vmatpush1.bf16.msra.mxu1 %v2917_v14  ;;  %2105 = vmatprep.subr.bf16.mxu0 %v2921_v18 }
  0x4d   :  { %2137 = vmatprep.subr.bf16.mxu1 %v2923_v19  ;;  %472 = vmatprep.mubr.f32.mxu0 %v3455_v0 }
  0x4e   :  { %543 = vmatprep.mubr.f32.mxu1 %v3455_v0 }
  0x4f   :  { %2107 = vmatpush1.bf16.msra.mxu0 %v2926_v23 }
  0x50   :  { %2139 = vmatpush1.bf16.msra.mxu1 %v2930_v27  ;;  %2109 = vmatprep.subr.bf16.mxu0 %v2932_v28 }
  0x51   :  { %2141 = vmatprep.subr.bf16.mxu1 %v2934_v32 }
  0x53   :  { %2111 = vmatpush1.bf16.msra.mxu0 %v2937_v36 }
  0x54   :  { %2143 = vmatpush1.bf16.msra.mxu1 %v2941_v40  ;;  %2113 = vmatprep.subr.bf16.mxu0 %v2943_v41 }
  0x55   :  { %2145 = vmatprep.subr.bf16.mxu1 %v2946_v45 }
  0x57   :  { %2115 = vmatpush1.bf16.msra.mxu0 %v2949_v52 }
  0x58   :  { %2147 = vmatpush1.bf16.msra.mxu1 %v2953_v53  ;;  %2117 = vmatprep.subr.bf16.mxu0 %v2955_v54 }
  0x59   :  { %2149 = vmatprep.subr.bf16.mxu1 %v2958_v58 }
  0x5b   :  { %2119 = vmatpush1.bf16.msra.mxu0 %v2961_v1 }
  0x5c   :  { %2151 = vmatpush1.bf16.msra.mxu1 %v2965_v2  ;;  %2121 = vmatprep.subr.bf16.mxu0 %v2967_v3 }
  0x5d   :  { %2153 = vmatprep.subr.bf16.mxu1 %v2970_v8 }
  0x5f   :  { %2123 = vmatpush1.bf16.msra.mxu0 %v2973_v17 }
  0x60   :  { %2155 = vmatpush1.bf16.msra.mxu1 %v2977_v21  ;;  %2125 = vmatprep.subr.bf16.mxu0 %v2979_v22 }
  0x61   :  { %2157 = vmatprep.subr.bf16.mxu1 %v2984_v29 }
  0x63   :  { %2127 = vmatpush1.bf16.msra.mxu0 %v2988_v37 }
  0x64   :  { %2159 = vmatpush1.bf16.msra.mxu1 %v2992_v38  ;;  %2129 = vmatprep.subr.bf16.mxu0 %v2994_v39 }
  0x65   :  { %2161 = vmatprep.subr.bf16.mxu1 %v2997_v44 }
  0x67   :  { %2131 = vmatpush1.bf16.msra.mxu0 %v3001_v49 }
  0x68   :  { %2163 = vmatpush1.bf16.msra.mxu1 %v3005_v50  ;;  %2165 = vmatprep.subr.bf16.mxu0 %v2910_v5 }
  0x69   :  { %2197 = vmatprep.subr.bf16.mxu1 %v2912_v9 }
  0xb8   :  { %v144_v59 = vpop.permute.xlu0 %143 }
  0xb9   :  { %v162_v15 = vmul.f32 %v3050_v4, %v144_v59  ;;  %v163_v24 = vmul.f32 %v3054_v7, %v144_v59  ;;  %v165_v46 = vmul.f32 %v3064_v30, %v144_v59 }
  0xbd   :  { %v168_v11 = vpop.permute.xlu0 %167 }
  0xbe   :  { %v186_v16 = vmul.f32 %v3052_v6, %v168_v11  ;;  %v187_v25 = vmul.f32 %v3056_v12, %v168_v11  ;;  %v189_v47 = vmul.f32 %v3066_v31, %v168_v11  ;;  %v164_v31 = vmul.f32 %v3076_v48, %v144_v59 }
  0xbf   :  { %v188_v60 = vmul.f32 %v3078_v51, %v168_v11 }
  0xc0   :  { %v190_v33 = vadd.f32 %v186_v16, %v162_v15  ;;  %v191_v42 = vadd.f32 %v187_v25, %v163_v24  ;;  %v193_v25 = vadd.f32 %v189_v47, %v165_v46 }
  0xc2   :  { %v210_v55 = vadd.f32 %v3069_v34, %v190_v33  ;;  %v211_v57 = vadd.f32 %v3072_v43, %v191_v42  ;;  %v213_v33 = vadd.f32 %v3083_v63, %v193_v25  ;;  %v192_v42 = vadd.f32 %v188_v60, %v164_v31 }
 0x11d   :  { %v280_v56 = vpop.f32.mrb[0].mxu0 }
 0x11e   :  { %v356_v62 = vadd.f32 %v280_v56, %v210_v55  ;;  %v351_v15 = vpop.f32.mrb[0].mxu1  ;;  %v282_v16 = vpop.f32.mrb[1].mxu0  ;;  %v3089_v55 = vrot.slane %v136_v35, %v3060_v20 }
 0x11f   :  { %v357_v24 = vadd.f32 %v282_v16, %v211_v57  ;;  %v353_v0 = vpop.f32.mrb[1].mxu1 }
 0x120   :  { %v1908_v61 = vmul.f32 -1.442695, %v356_v62  ;;  %v359_v56 = vadd.f32 %v353_v0, %v213_v33  ;;  %v212_v46 = vadd.f32 %v3089_v55, %v192_v42  ;;  %v3496_v42 = vmov 0.0  }
 0x121   :  { %v1909_v30 = vmul.f32 -1.442695, %v357_v24 }
 0x122   :  { %2637 = vpow2.f32 %v1908_v61  ;;  %v1910_v13 = vmul.f32 -1.442695, %v359_v56  ;;  %v358_v47 = vadd.f32 %v351_v15, %v212_v46  ;;  %v2847_v56 = vmov 4  }
 0x123   :  { %2639 = vpow2.f32 %v1909_v30  ;;  %2624 = vset.pattern.permute.xlu1 %v2847_v56  ;;  %v2848_v46 = vmov 5  }
 0x124   :  { %2641 = vpow2.f32 %v1910_v13  ;;  %2625 = vset.pattern.permute.xlu0 %v2848_v46  ;;  %579 = vperm.xlu1 %2624, %v2981_v26   ;;  %v386_v13 = vpop.permute.xlu1 %385 }
 0x125   :  { %2643 = vtanh.f32 %v358_v47  ;;  %587 = vperm.xlu0 %2625, %v2981_v26  }
 0x128   :  { %v394_v47 = vpop.permute.xlu1 %393 }
 0x12c   :  { %v2638_v57 = vpop.eup %2637 }
 0x12d   :  { %v2640_v16 = vpop.eup %2639  ;;  %v366_v59 = vadd.f32 1.0, %v2638_v57  ;;  %v388_v57 = vmul.f32 %v386_v13, %v3050_v4 }
 0x12e   :  { %v367_v11 = vadd.f32 1.0, %v2640_v16  ;;  %v2642_v30 = vpop.eup %2641  ;;  %v396_v16 = vmul.f32 %v394_v47, %v3052_v6 }
 0x12f   :  { %2645 = vrcp.f32 %v366_v59  ;;  %v2644_v62 = vpop.eup %2643  ;;  %v376_v35 = vadd.f32 1.0, %v2642_v30  ;;  %v389_v59 = vmul.f32 %v386_v13, %v3054_v7  ;;  %v390_v7 = vmul.f32 %v386_v13, %v3076_v48 }
 0x130   :  { %2647 = vrcp.f32 %v367_v11  ;;  %v397_v11 = vmul.f32 %v394_v47, %v3056_v12  ;;  %v400_v30 = vadd.f32 %v396_v16, %v388_v57  ;;  %v398_v57 = vmul.f32 %v394_v47, %v3078_v51 }
 0x131   :  { %2649 = vrcp.f32 %v376_v35 }
 0x139   :  { %v2646_v24 = vpop.eup %2645 }
 0x13a   :  { %v2648_v31 = vpop.eup %2647  ;;  %v380_v25 = vmul.f32 %v2646_v24, %v2644_v62  ;;  %v401_v62 = vadd.f32 %v397_v11, %v389_v59  ;;  %v3497_v24 = vld [vmem:[#allocation16_spill] sm:$0xff] }
 0x13b   :  { %v379_v60 = vmul.f32 0.0, %v2648_v31  ;;  %v2650_v15 = vpop.eup %2649  ;;  %v391_v31 = vmul.f32 %v386_v13, %v3497_v24 }
 0x13d   :  { %v3092_v0 = vadd.f32 %v380_v25, %v379_v60  ;;  %v3498_v25 = vld [vmem:[#allocation17_spill] sm:$0xff]  ;;  %v404_v60 = vadd.f32 %v400_v30, %v3069_v34  ;;  %v402_v30 = vadd.f32 %v398_v57, %v390_v7 }
 0x13e   :  { %v399_v35 = vmul.f32 %v394_v47, %v3498_v25 }
 0x13f   :  { %2651 = vtanh.f32 %v3092_v0  ;;  %v406_v25 = vadd.f32 %v402_v30, %v3089_v55 }
 0x140   :  { %v403_v4 = vadd.f32 %v399_v35, %v391_v31 }
 0x142   :  { %v407_v11 = vadd.f32 %v403_v4, %v3083_v63 }
 0x149   :  { %v2652_v61 = vpop.eup %2651 }
 0x14a   :  { %v383_v33 = vmul.f32 %v2652_v61, %v2650_v15 }
 0x14c   :  { %473 = vmatmul.mubr.f32.vlgmr.msra.gmra.mrb[2].mxu0 %v383_v33  ;;  %544 = vmatmul.mubr.f32.vlgmr.msra.gmra.mrb[2].mxu1 %v383_v33  ;;  %v405_v33 = vadd.f32 %v401_v62, %v3072_v43 }
 0x14d   :  { %2167 = vmatpush1.bf16.msra.mxu0 %v2914_v10  ;;  %2199 = vmatpush1.bf16.msra.mxu1 %v2917_v14 }
 0x14e   :  { %2169 = vmatprep.subr.bf16.mxu0 %v2921_v18  ;;  %2201 = vmatprep.subr.bf16.mxu1 %v2923_v19 }
 0x14f   :  { %666 = vmatprep.mubr.f32.mxu0 %v3496_v42  ;;  %737 = vmatprep.mubr.f32.mxu1 %v3496_v42 }
 0x151   :  { %2171 = vmatpush1.bf16.msra.mxu0 %v2926_v23  ;;  %2203 = vmatpush1.bf16.msra.mxu1 %v2930_v27 }
 0x152   :  { %2173 = vmatprep.subr.bf16.mxu0 %v2932_v28  ;;  %2205 = vmatprep.subr.bf16.mxu1 %v2934_v32 }
 0x155   :  { %2175 = vmatpush1.bf16.msra.mxu0 %v2937_v36  ;;  %2207 = vmatpush1.bf16.msra.mxu1 %v2941_v40 }
 0x156   :  { %2177 = vmatprep.subr.bf16.mxu0 %v2943_v41  ;;  %2209 = vmatprep.subr.bf16.mxu1 %v2946_v45 }
 0x159   :  { %2179 = vmatpush1.bf16.msra.mxu0 %v2949_v52  ;;  %2211 = vmatpush1.bf16.msra.mxu1 %v2953_v53 }
 0x15a   :  { %2181 = vmatprep.subr.bf16.mxu0 %v2955_v54  ;;  %2213 = vmatprep.subr.bf16.mxu1 %v2958_v58 }
 0x15d   :  { %2183 = vmatpush1.bf16.msra.mxu0 %v2961_v1  ;;  %2215 = vmatpush1.bf16.msra.mxu1 %v2965_v2 }
 0x15e   :  { %2185 = vmatprep.subr.bf16.mxu0 %v2967_v3  ;;  %2217 = vmatprep.subr.bf16.mxu1 %v2970_v8 }
 0x161   :  { %2187 = vmatpush1.bf16.msra.mxu0 %v2973_v17  ;;  %2219 = vmatpush1.bf16.msra.mxu1 %v2977_v21 }
 0x162   :  { %2189 = vmatprep.subr.bf16.mxu0 %v2979_v22  ;;  %2221 = vmatprep.subr.bf16.mxu1 %v2984_v29 }
 0x165   :  { %2191 = vmatpush1.bf16.msra.mxu0 %v2988_v37  ;;  %2223 = vmatpush1.bf16.msra.mxu1 %v2992_v38 }
 0x166   :  { %2193 = vmatprep.subr.bf16.mxu0 %v2994_v39  ;;  %2225 = vmatprep.subr.bf16.mxu1 %v2997_v44 }
 0x169   :  { %2195 = vmatpush1.bf16.msra.mxu0 %v3001_v49  ;;  %2227 = vmatpush1.bf16.msra.mxu1 %v3005_v50 }
 0x16a   :  { %2229 = vmatprep.subr.bf16.mxu0 %v2910_v5  ;;  %2261 = vmatprep.subr.bf16.mxu1 %v2912_v9 }
 0x1a4   :  { %v588_v57 = vpop.permute.xlu0 %587 }
 0x21f   :  { %v474_v15 = vpop.f32.mrb[2].mxu0  ;;  %v545_v61 = vpop.f32.mrb[2].mxu1 }
 0x220   :  { %v550_v56 = vadd.f32 %v474_v15, %v404_v60  ;;  %v476_v46 = vpop.f32.mrb[3].mxu0  ;;  %v547_v20 = vpop.f32.mrb[3].mxu1  ;;  %v552_v60 = vadd.f32 %v545_v61, %v406_v25 }
 0x221   :  { %v551_v6 = vadd.f32 %v476_v46, %v405_v33  ;;  %v553_v34 = vadd.f32 %v547_v20, %v407_v11  ;;  %v580_v46 = vpop.permute.xlu1 %579  ;;  %v3500_v11 = vld [vmem:[#allocation12_spill] sm:$0xff] }
 0x222   :  { %v1911_v16 = vmul.f32 -1.442695, %v550_v56  ;;  %v590_v30 = vmul.f32 %v588_v57, %v3500_v11 }
 0x223   :  { %v1912_v59 = vmul.f32 -1.442695, %v551_v6  ;;  %v1913_v62 = vmul.f32 -1.442695, %v553_v34 }
 0x224   :  { %2653 = vpow2.f32 %v1911_v16  ;;  %v3499_v16 = vld [vmem:[#allocation11_spill] sm:$0xff] }
 0x225   :  { %2655 = vpow2.f32 %v1912_v59  ;;  %v582_v59 = vmul.f32 %v580_v46, %v3499_v16 }
 0x226   :  { %2657 = vpow2.f32 %v1913_v62  ;;  %v3501_v62 = vld [vmem:[#allocation13_spill] sm:$0xff] }
 0x227   :  { %2659 = vtanh.f32 %v552_v60  ;;  %v583_v60 = vmul.f32 %v580_v46, %v3501_v62 }
 0x22e   :  { %v2654_v15 = vpop.eup %2653 }
 0x22f   :  { %v2656_v43 = vpop.eup %2655  ;;  %v560_v33 = vadd.f32 1.0, %v2654_v15  ;;  %v591_v15 = vmul.f32 %v588_v57, %v3056_v12 }
 0x230   :  { %v561_v13 = vadd.f32 1.0, %v2656_v43  ;;  %v2658_v47 = vpop.eup %2657  ;;  %v2849_v43 = vmov 6  }
 0x231   :  { %2661 = vrcp.f32 %v560_v33  ;;  %v2660_v6 = vpop.eup %2659  ;;  %v570_v4 = vadd.f32 1.0, %v2658_v47  ;;  %2626 = vset.pattern.permute.xlu1 %v2849_v43  ;;  %v594_v33 = vadd.f32 %v590_v30, %v582_v59  ;;  %v585_v47 = vmul.f32 %v580_v46, %v3497_v24 }
 0x232   :  { %2663 = vrcp.f32 %v561_v13  ;;  %773 = vperm.xlu1 %2626, %v2981_v26   ;;  %v595_v13 = vadd.f32 %v591_v15, %v583_v60  ;;  %v584_v43 = vmul.f32 %v580_v46, %v3076_v48 }
 0x233   :  { %2665 = vrcp.f32 %v570_v4  ;;  %v3504_v4 = vld [vmem:[#allocation19_spill] sm:$0xff] }
 0x23b   :  { %v2662_v31 = vpop.eup %2661 }
 0x23c   :  { %v2664_v35 = vpop.eup %2663  ;;  %v574_v56 = vmul.f32 %v2662_v31, %v2660_v6  ;;  %v3502_v6 = vld [vmem:[#allocation17_spill] sm:$0xff] }
 0x23d   :  { %v573_v7 = vmul.f32 %v2664_v35, %v3092_v0  ;;  %v2666_v34 = vpop.eup %2665  ;;  %v2850_v0 = vmov 7   ;;  %v593_v31 = vmul.f32 %v588_v57, %v3502_v6  ;;  %v3503_v35 = vld [vmem:[#allocation18_spill] sm:$0xff] }
 0x23e   :  { %2627 = vset.pattern.permute.xlu1 %v2850_v0  ;;  %v592_v0 = vmul.f32 %v588_v57, %v3078_v51 }
 0x23f   :  { %v3144_v20 = vadd.f32 %v574_v56, %v573_v7  ;;  %781 = vperm.xlu1 %2627, %v2981_v26   ;;  %v598_v56 = vadd.f32 %v594_v33, %v3503_v35  ;;  %v599_v7 = vadd.f32 %v595_v13, %v3504_v4 }
 0x240   :  { %v596_v6 = vadd.f32 %v592_v0, %v584_v43 }
 0x241   :  { %2667 = vtanh.f32 %v3144_v20 }
 0x242   :  { %v600_v13 = vadd.f32 %v596_v6, %v3089_v55 }
 0x24b   :  { %v2668_v25 = vpop.eup %2667 }
 0x24c   :  { %v577_v61 = vmul.f32 %v2668_v25, %v2666_v34 }
 0x24e   :  { %667 = vmatmul.mubr.f32.vlgmr.msra.gmra.mrb[4].mxu0 %v577_v61  ;;  %738 = vmatmul.mubr.f32.vlgmr.msra.gmra.mrb[4].mxu1 %v577_v61  ;;  %v597_v61 = vadd.f32 %v593_v31, %v585_v47 }
 0x24f   :  { %2231 = vmatpush1.bf16.msra.mxu0 %v2914_v10  ;;  %2263 = vmatpush1.bf16.msra.mxu1 %v2917_v14 }
 0x250   :  { %2233 = vmatprep.subr.bf16.mxu0 %v2921_v18  ;;  %2265 = vmatprep.subr.bf16.mxu1 %v2923_v19  ;;  %v601_v15 = vadd.f32 %v597_v61, %v3083_v63 }
 0x251   :  { %860 = vmatprep.mubr.f32.mxu0 %v3496_v42  ;;  %931 = vmatprep.mubr.f32.mxu1 %v3496_v42 }
 0x253   :  { %2235 = vmatpush1.bf16.msra.mxu0 %v2926_v23  ;;  %2267 = vmatpush1.bf16.msra.mxu1 %v2930_v27 }
 0x254   :  { %2237 = vmatprep.subr.bf16.mxu0 %v2932_v28  ;;  %2269 = vmatprep.subr.bf16.mxu1 %v2934_v32 }
 0x257   :  { %2239 = vmatpush1.bf16.msra.mxu0 %v2937_v36  ;;  %2271 = vmatpush1.bf16.msra.mxu1 %v2941_v40 }
 0x258   :  { %2241 = vmatprep.subr.bf16.mxu0 %v2943_v41  ;;  %2273 = vmatprep.subr.bf16.mxu1 %v2946_v45 }
 0x25b   :  { %2243 = vmatpush1.bf16.msra.mxu0 %v2949_v52  ;;  %2275 = vmatpush1.bf16.msra.mxu1 %v2953_v53 }
 0x25c   :  { %2245 = vmatprep.subr.bf16.mxu0 %v2955_v54  ;;  %2277 = vmatprep.subr.bf16.mxu1 %v2958_v58 }
 0x25f   :  { %2247 = vmatpush1.bf16.msra.mxu0 %v2961_v1  ;;  %2279 = vmatpush1.bf16.msra.mxu1 %v2965_v2 }
 0x260   :  { %2249 = vmatprep.subr.bf16.mxu0 %v2967_v3  ;;  %2281 = vmatprep.subr.bf16.mxu1 %v2970_v8 }
 0x263   :  { %2251 = vmatpush1.bf16.msra.mxu0 %v2973_v17  ;;  %2283 = vmatpush1.bf16.msra.mxu1 %v2977_v21 }
 0x264   :  { %2253 = vmatprep.subr.bf16.mxu0 %v2979_v22  ;;  %2285 = vmatprep.subr.bf16.mxu1 %v2984_v29 }
 0x267   :  { %2255 = vmatpush1.bf16.msra.mxu0 %v2988_v37  ;;  %2287 = vmatpush1.bf16.msra.mxu1 %v2992_v38 }
 0x268   :  { %2257 = vmatprep.subr.bf16.mxu0 %v2994_v39  ;;  %2289 = vmatprep.subr.bf16.mxu1 %v2997_v44 }
 0x26b   :  { %2259 = vmatpush1.bf16.msra.mxu0 %v3001_v49  ;;  %2291 = vmatpush1.bf16.msra.mxu1 %v3005_v50 }
 0x26c   :  { %2293 = vmatprep.subr.bf16.mxu0 %v2910_v5  ;;  %2325 = vmatprep.subr.bf16.mxu1 %v2912_v9 }
 0x2b1   :  { %v774_v0 = vpop.permute.xlu1 %773 }
 0x321   :  { %v668_v34 = vpop.f32.mrb[4].mxu0  ;;  %v739_v25 = vpop.f32.mrb[4].mxu1 }
 0x322   :  { %v744_v62 = vadd.f32 %v668_v34, %v598_v56  ;;  %v670_v11 = vpop.f32.mrb[5].mxu0  ;;  %v741_v12 = vpop.f32.mrb[5].mxu1  ;;  %v746_v47 = vadd.f32 %v739_v25, %v600_v13 }
 0x323   :  { %v745_v59 = vadd.f32 %v670_v11, %v599_v7  ;;  %v747_v33 = vadd.f32 %v741_v12, %v601_v15 }
 0x324   :  { %v1914_v30 = vmul.f32 -1.442695, %v744_v62 }
 0x325   :  { %v1915_v60 = vmul.f32 -1.442695, %v745_v59  ;;  %v1916_v4 = vmul.f32 -1.442695, %v747_v33  ;;  %v782_v59 = vpop.permute.xlu1 %781  ;;  %v3506_v33 = vld [vmem:[#allocation13_spill] sm:$0xff] }
 0x326   :  { %2669 = vpow2.f32 %v1914_v30  ;;  %v776_v30 = vmul.f32 %v774_v0, %v3499_v16  ;;  %v777_v13 = vmul.f32 %v774_v0, %v3506_v33  ;;  %v3510_v33 = vld [vmem:[#allocation20_spill] sm:$0xff] }
 0x327   :  { %2671 = vpow2.f32 %v1915_v60  ;;  %v3505_v60 = vld [vmem:[#allocation12_spill] sm:$0xff] }
 0x328   :  { %2673 = vpow2.f32 %v1916_v4  ;;  %v784_v15 = vmul.f32 %v782_v59, %v3505_v60  ;;  %v778_v60 = vmul.f32 %v774_v0, %v3510_v33 }
 0x329   :  { %2675 = vtanh.f32 %v746_v47  ;;  %v3507_v47 = vld [vmem:[#allocation14_spill] sm:$0xff] }
 0x330   :  { %v2670_v31 = vpop.eup %2669 }
 0x331   :  { %v2672_v46 = vpop.eup %2671  ;;  %v754_v48 = vadd.f32 1.0, %v2670_v31  ;;  %v785_v31 = vmul.f32 %v782_v59, %v3507_v47 }
 0x332   :  { %v755_v57 = vadd.f32 1.0, %v2672_v46  ;;  %v2674_v11 = vpop.eup %2673  ;;  %v788_v46 = vadd.f32 %v784_v15, %v776_v30  ;;  %v786_v30 = vmul.f32 %v782_v59, %v3078_v51 }
 0x333   :  { %2677 = vrcp.f32 %v754_v48  ;;  %v2676_v62 = vpop.eup %2675  ;;  %v764_v61 = vadd.f32 1.0, %v2674_v11  ;;  %v2851_v48 = vmov 9   ;;  %v779_v11 = vmul.f32 %v774_v0, %v3497_v24 }
 0x334   :  { %2679 = vrcp.f32 %v755_v57  ;;  %2629 = vset.pattern.permute.xlu1 %v2851_v48  ;;  %v789_v57 = vadd.f32 %v785_v31, %v777_v13 }
 0x335   :  { %2681 = vrcp.f32 %v764_v61  ;;  %975 = vperm.xlu1 %2629, %v2981_v26  }
 0x33d   :  { %v2678_v56 = vpop.eup %2677 }
 0x33e   :  { %v2680_v7 = vpop.eup %2679  ;;  %v768_v34 = vmul.f32 %v2678_v56, %v2676_v62  ;;  %v3508_v62 = vld [vmem:[#allocation17_spill] sm:$0xff] }
 0x33f   :  { %v767_v12 = vmul.f32 %v2680_v7, %v3144_v20  ;;  %v2682_v6 = vpop.eup %2681  ;;  %v2852_v20 = vmov 8   ;;  %v787_v56 = vmul.f32 %v782_v59, %v3508_v62  ;;  %v792_v7 = vadd.f32 %v788_v46, %v3503_v35 }
 0x340   :  { %2628 = vset.pattern.permute.xlu0 %v2852_v20  ;;  %v790_v46 = vadd.f32 %v786_v30, %v778_v60 }
 0x341   :  { %v3196_v43 = vadd.f32 %v768_v34, %v767_v12  ;;  %967 = vperm.xlu0 %2628, %v2981_v26   ;;  %v3509_v12 = vld [vmem:[#allocation19_spill] sm:$0xff]  ;;  %v791_v16 = vadd.f32 %v787_v56, %v779_v11 }
 0x342   :  { %v794_v24 = vadd.f32 %v790_v46, %v3089_v55 }
 0x343   :  { %2683 = vtanh.f32 %v3196_v43  ;;  %v795_v31 = vadd.f32 %v791_v16, %v3083_v63 }
 0x34d   :  { %v2684_v25 = vpop.eup %2683 }
 0x34e   :  { %v771_v4 = vmul.f32 %v2684_v25, %v2682_v6  ;;  %v793_v6 = vadd.f32 %v789_v57, %v3509_v12 }
 0x350   :  { %861 = vmatmul.mubr.f32.vlgmr.msra.gmra.mrb[6].mxu0 %v771_v4  ;;  %932 = vmatmul.mubr.f32.vlgmr.msra.gmra.mrb[6].mxu1 %v771_v4 }
 0x351   :  { %2295 = vmatpush1.bf16.msra.mxu0 %v2914_v10  ;;  %2327 = vmatpush1.bf16.msra.mxu1 %v2917_v14 }
 0x352   :  { %2297 = vmatprep.subr.bf16.mxu0 %v2921_v18  ;;  %2329 = vmatprep.subr.bf16.mxu1 %v2923_v19 }
 0x353   :  { %1054 = vmatprep.mubr.f32.mxu0 %v3496_v42  ;;  %1125 = vmatprep.mubr.f32.mxu1 %v3496_v42 }
 0x355   :  { %2299 = vmatpush1.bf16.msra.mxu0 %v2926_v23  ;;  %2331 = vmatpush1.bf16.msra.mxu1 %v2930_v27 }
 0x356   :  { %2301 = vmatprep.subr.bf16.mxu0 %v2932_v28  ;;  %2333 = vmatprep.subr.bf16.mxu1 %v2934_v32 }
 0x359   :  { %2303 = vmatpush1.bf16.msra.mxu0 %v2937_v36  ;;  %2335 = vmatpush1.bf16.msra.mxu1 %v2941_v40 }
 0x35a   :  { %2305 = vmatprep.subr.bf16.mxu0 %v2943_v41  ;;  %2337 = vmatprep.subr.bf16.mxu1 %v2946_v45 }
 0x35d   :  { %2307 = vmatpush1.bf16.msra.mxu0 %v2949_v52  ;;  %2339 = vmatpush1.bf16.msra.mxu1 %v2953_v53 }
 0x35e   :  { %2309 = vmatprep.subr.bf16.mxu0 %v2955_v54  ;;  %2341 = vmatprep.subr.bf16.mxu1 %v2958_v58 }
 0x361   :  { %2311 = vmatpush1.bf16.msra.mxu0 %v2961_v1  ;;  %2343 = vmatpush1.bf16.msra.mxu1 %v2965_v2 }
 0x362   :  { %2313 = vmatprep.subr.bf16.mxu0 %v2967_v3  ;;  %2345 = vmatprep.subr.bf16.mxu1 %v2970_v8 }
 0x365   :  { %2315 = vmatpush1.bf16.msra.mxu0 %v2973_v17  ;;  %2347 = vmatpush1.bf16.msra.mxu1 %v2977_v21 }
 0x366   :  { %2317 = vmatprep.subr.bf16.mxu0 %v2979_v22  ;;  %2349 = vmatprep.subr.bf16.mxu1 %v2984_v29 }
 0x369   :  { %2319 = vmatpush1.bf16.msra.mxu0 %v2988_v37  ;;  %2351 = vmatpush1.bf16.msra.mxu1 %v2992_v38 }
 0x36a   :  { %2321 = vmatprep.subr.bf16.mxu0 %v2994_v39  ;;  %2353 = vmatprep.subr.bf16.mxu1 %v2997_v44 }
 0x36d   :  { %2323 = vmatpush1.bf16.msra.mxu0 %v3001_v49  ;;  %2355 = vmatpush1.bf16.msra.mxu1 %v3005_v50 }
 0x36e   :  { %2357 = vmatprep.subr.bf16.mxu0 %v2910_v5  ;;  %2389 = vmatprep.subr.bf16.mxu1 %v2912_v9 }
 0x3c0   :  { %v968_v30 = vpop.permute.xlu0 %967 }
 0x423   :  { %v862_v34 = vpop.f32.mrb[6].mxu0  ;;  %v933_v61 = vpop.f32.mrb[6].mxu1 }
 0x424   :  { %v938_v25 = vadd.f32 %v862_v34, %v792_v7  ;;  %v864_v4 = vpop.f32.mrb[7].mxu0  ;;  %v935_v48 = vpop.f32.mrb[7].mxu1  ;;  %v940_v7 = vadd.f32 %v933_v61, %v794_v24 }
 0x425   :  { %v939_v20 = vadd.f32 %v864_v4, %v793_v6  ;;  %v941_v35 = vadd.f32 %v935_v48, %v795_v31  ;;  %v3512_v31 = vld [vmem:[#allocation11_spill] sm:$0xff] }
 0x426   :  { %v1917_v15 = vmul.f32 -1.442695, %v938_v25  ;;  %v970_v46 = vmul.f32 %v968_v30, %v3512_v31 }
 0x427   :  { %v1918_v13 = vmul.f32 -1.442695, %v939_v20  ;;  %v1919_v57 = vmul.f32 -1.442695, %v941_v35  ;;  %v976_v20 = vpop.permute.xlu1 %975 }
 0x428   :  { %2685 = vpow2.f32 %v1917_v15  ;;  %v3511_v15 = vld [vmem:[#allocation12_spill] sm:$0xff] }
 0x429   :  { %2687 = vpow2.f32 %v1918_v13  ;;  %v978_v13 = vmul.f32 %v976_v20, %v3511_v15 }
 0x42a   :  { %2689 = vpow2.f32 %v1919_v57  ;;  %v979_v57 = vmul.f32 %v976_v20, %v3507_v47 }
 0x42b   :  { %2691 = vtanh.f32 %v940_v7  ;;  %v3513_v7 = vld [vmem:[#allocation13_spill] sm:$0xff] }
 0x432   :  { %v2686_v34 = vpop.eup %2685 }
 0x433   :  { %v2688_v12 = vpop.eup %2687  ;;  %v948_v6 = vadd.f32 1.0, %v2686_v34  ;;  %v971_v34 = vmul.f32 %v968_v30, %v3513_v7 }
 0x434   :  { %v949_v0 = vadd.f32 1.0, %v2688_v12  ;;  %v2690_v59 = vpop.eup %2689  ;;  %v2854_v12 = vmov 11  }
 0x435   :  { %2693 = vrcp.f32 %v948_v6  ;;  %v2692_v11 = vpop.eup %2691  ;;  %v958_v16 = vadd.f32 1.0, %v2690_v59  ;;  %2631 = vset.pattern.permute.xlu0 %v2854_v12  ;;  %v982_v6 = vadd.f32 %v978_v13, %v970_v46  ;;  %v981_v59 = vmul.f32 %v976_v20, %v3508_v62 }
 0x436   :  { %2695 = vrcp.f32 %v949_v0  ;;  %1169 = vperm.xlu0 %2631, %v2981_v26   ;;  %v983_v0 = vadd.f32 %v979_v57, %v971_v34 }
 0x437   :  { %2697 = vrcp.f32 %v958_v16  ;;  %v3516_v16 = vld [vmem:[#allocation19_spill] sm:$0xff] }
 0x43f   :  { %v2694_v56 = vpop.eup %2693 }
 0x440   :  { %v2696_v25 = vpop.eup %2695  ;;  %v962_v4 = vmul.f32 %v2694_v56, %v2692_v11  ;;  %v3514_v11 = vld [vmem:[#allocation16_spill] sm:$0xff] }
 0x441   :  { %v961_v60 = vmul.f32 %v2696_v25, %v3196_v43  ;;  %v2698_v24 = vpop.eup %2697  ;;  %v2853_v43 = vmov 10   ;;  %v973_v56 = vmul.f32 %v968_v30, %v3514_v11  ;;  %v3515_v25 = vld [vmem:[#allocation18_spill] sm:$0xff] }
 0x442   :  { %2630 = vset.pattern.permute.xlu1 %v2853_v43  ;;  %v972_v43 = vmul.f32 %v968_v30, %v3510_v33 }
 0x443   :  { %v3248_v48 = vadd.f32 %v962_v4, %v961_v60  ;;  %1161 = vperm.xlu1 %2630, %v2981_v26   ;;  %v986_v4 = vadd.f32 %v982_v6, %v3515_v25  ;;  %v987_v26 = vadd.f32 %v983_v0, %v3516_v16 }
 0x445   :  { %2699 = vtanh.f32 %v3248_v48 }
 0x44f   :  { %v2700_v35 = vpop.eup %2699 }
 0x450   :  { %v965_v61 = vmul.f32 %v2700_v35, %v2698_v24  ;;  %v985_v35 = vadd.f32 %v981_v59, %v973_v56 }
 0x452   :  { %1055 = vmatmul.mubr.f32.vlgmr.msra.gmra.mrb[8].mxu0 %v965_v61  ;;  %1126 = vmatmul.mubr.f32.vlgmr.msra.gmra.mrb[8].mxu1 %v965_v61  ;;  %v980_v61 = vmul.f32 %v976_v20, %v3078_v51  ;;  %v989_v34 = vadd.f32 %v985_v35, %v3083_v63 }
 0x453   :  { %2359 = vmatpush1.bf16.msra.mxu0 %v2914_v10  ;;  %2391 = vmatpush1.bf16.msra.mxu1 %v2917_v14 }
 0x454   :  { %2361 = vmatprep.subr.bf16.mxu0 %v2921_v18  ;;  %2393 = vmatprep.subr.bf16.mxu1 %v2923_v19  ;;  %v984_v62 = vadd.f32 %v980_v61, %v972_v43 }
 0x455   :  { %1248 = vmatprep.mubr.f32.mxu0 %v3496_v42  ;;  %1319 = vmatprep.mubr.f32.mxu1 %v3496_v42 }
 0x456   :  { %v988_v0 = vadd.f32 %v984_v62, %v3089_v55 }
 0x457   :  { %2363 = vmatpush1.bf16.msra.mxu0 %v2926_v23  ;;  %2395 = vmatpush1.bf16.msra.mxu1 %v2930_v27 }
 0x458   :  { %2365 = vmatprep.subr.bf16.mxu0 %v2932_v28  ;;  %2397 = vmatprep.subr.bf16.mxu1 %v2934_v32 }
 0x45b   :  { %2367 = vmatpush1.bf16.msra.mxu0 %v2937_v36  ;;  %2399 = vmatpush1.bf16.msra.mxu1 %v2941_v40 }
 0x45c   :  { %2369 = vmatprep.subr.bf16.mxu0 %v2943_v41  ;;  %2401 = vmatprep.subr.bf16.mxu1 %v2946_v45 }
 0x45f   :  { %2371 = vmatpush1.bf16.msra.mxu0 %v2949_v52  ;;  %2403 = vmatpush1.bf16.msra.mxu1 %v2953_v53 }
 0x460   :  { %2373 = vmatprep.subr.bf16.mxu0 %v2955_v54  ;;  %2405 = vmatprep.subr.bf16.mxu1 %v2958_v58 }
 0x463   :  { %2375 = vmatpush1.bf16.msra.mxu0 %v2961_v1  ;;  %2407 = vmatpush1.bf16.msra.mxu1 %v2965_v2 }
 0x464   :  { %2377 = vmatprep.subr.bf16.mxu0 %v2967_v3  ;;  %2409 = vmatprep.subr.bf16.mxu1 %v2970_v8 }
 0x467   :  { %2379 = vmatpush1.bf16.msra.mxu0 %v2973_v17  ;;  %2411 = vmatpush1.bf16.msra.mxu1 %v2977_v21 }
 0x468   :  { %2381 = vmatprep.subr.bf16.mxu0 %v2979_v22  ;;  %2413 = vmatprep.subr.bf16.mxu1 %v2984_v29 }
 0x46b   :  { %2383 = vmatpush1.bf16.msra.mxu0 %v2988_v37  ;;  %2415 = vmatpush1.bf16.msra.mxu1 %v2992_v38 }
 0x46c   :  { %2385 = vmatprep.subr.bf16.mxu0 %v2994_v39  ;;  %2417 = vmatprep.subr.bf16.mxu1 %v2997_v44 }
 0x46f   :  { %2387 = vmatpush1.bf16.msra.mxu0 %v3001_v49  ;;  %2419 = vmatpush1.bf16.msra.mxu1 %v3005_v50 }
 0x470   :  { %2421 = vmatprep.subr.bf16.mxu0 %v2910_v5  ;;  %2453 = vmatprep.subr.bf16.mxu1 %v2912_v9 }
 0x525   :  { %v1056_v60 = vpop.f32.mrb[8].mxu0  ;;  %v1127_v24 = vpop.f32.mrb[8].mxu1 }
 0x526   :  { %v1132_v12 = vadd.f32 %v1056_v60, %v986_v4  ;;  %v1058_v47 = vpop.f32.mrb[9].mxu0  ;;  %v1129_v7 = vpop.f32.mrb[9].mxu1  ;;  %v1134_v59 = vadd.f32 %v1127_v24, %v988_v0  ;;  %v3518_v0 = vld [vmem:[#allocation14_spill] sm:$0xff] }
 0x527   :  { %v1133_v13 = vadd.f32 %v1058_v47, %v987_v26  ;;  %v1135_v6 = vadd.f32 %v1129_v7, %v989_v34 }
 0x528   :  { %v1920_v46 = vmul.f32 -1.442695, %v1132_v12  ;;  %v2856_v12 = vmov 13  }
 0x529   :  { %v1921_v57 = vmul.f32 -1.442695, %v1133_v13  ;;  %v1922_v16 = vmul.f32 -1.442695, %v1135_v6  ;;  %v1162_v13 = vpop.permute.xlu1 %1161  ;;  %v3517_v6 = vld [vmem:[#allocation13_spill] sm:$0xff] }
 0x52a   :  { %2701 = vpow2.f32 %v1920_v46  ;;  %v1170_v46 = vpop.permute.xlu0 %1169 }
 0x52b   :  { %2703 = vpow2.f32 %v1921_v57  ;;  %v1164_v57 = vmul.f32 %v1162_v13, %v3512_v31  ;;  %v1172_v34 = vmul.f32 %v1170_v46, %v3511_v15 }
 0x52c   :  { %2705 = vpow2.f32 %v1922_v16 }
 0x52d   :  { %2707 = vtanh.f32 %v1134_v59  ;;  %v1176_v59 = vadd.f32 %v1172_v34, %v1164_v57 }
 0x534   :  { %v2702_v56 = vpop.eup %2701 }
 0x535   :  { %v2704_v20 = vpop.eup %2703  ;;  %v1142_v51 = vadd.f32 1.0, %v2702_v56 }
 0x536   :  { %v1143_v30 = vadd.f32 1.0, %v2704_v20  ;;  %v2706_v47 = vpop.eup %2705  ;;  %v1167_v20 = vmul.f32 %v1162_v13, %v3514_v11 }
 0x537   :  { %2709 = vrcp.f32 %v1142_v51  ;;  %v2708_v4 = vpop.eup %2707  ;;  %v1152_v61 = vadd.f32 1.0, %v2706_v47  ;;  %v2855_v51 = vmov 12  }
 0x538   :  { %2711 = vrcp.f32 %v1143_v30  ;;  %2632 = vset.pattern.permute.xlu1 %v2855_v51  ;;  %v3519_v30 = vld [vmem:[#allocation17_spill] sm:$0xff] }
 0x539   :  { %2713 = vrcp.f32 %v1152_v61  ;;  %v1175_v47 = vmul.f32 %v1170_v46, %v3519_v30 }
 0x541   :  { %v2710_v26 = vpop.eup %2709 }
 0x542   :  { %v2712_v60 = vpop.eup %2711  ;;  %v1156_v35 = vmul.f32 %v2710_v26, %v2708_v4  ;;  %v1180_v4 = vadd.f32 %v1176_v59, %v3515_v25  ;;  %v3520_v26 = vld [vmem:[#allocation19_spill] sm:$0xff] }
 0x543   :  { %v1155_v7 = vmul.f32 %v2712_v60, %v3248_v48  ;;  %v2714_v62 = vpop.eup %2713  ;;  %v3337_v48 = vld [vmem:[#allocation2] sm:$0x3] }
 0x544   :  { %1355 = vperm.xlu1 %2632, %v3337_v48  }
 0x545   :  { %v3300_v43 = vadd.f32 %v1156_v35, %v1155_v7  ;;  %v1179_v7 = vadd.f32 %v1175_v47, %v1167_v20 }
 0x547   :  { %2715 = vtanh.f32 %v3300_v43 }
 0x548   :  { %2633 = vset.pattern.permute.xlu1 %v2856_v12 }
 0x549   :  { %1363 = vperm.xlu1 %2633, %v3337_v48  }
 0x551   :  { %v2716_v24 = vpop.eup %2715 }
 0x552   :  { %v1159_v16 = vmul.f32 %v2716_v24, %v2714_v62  ;;  %v1166_v62 = vmul.f32 %v1162_v13, %v3510_v33  ;;  %v3521_v24 = vld [vmem:[#allocation21_spill] sm:$0xff] }
 0x554   :  { %1249 = vmatmul.mubr.f32.vlgmr.msra.gmra.mrb[10].mxu0 %v1159_v16  ;;  %1320 = vmatmul.mubr.f32.vlgmr.msra.gmra.mrb[10].mxu1 %v1159_v16  ;;  %v1174_v16 = vmul.f32 %v1170_v46, %v3521_v24 }
 0x555   :  { %2423 = vmatpush1.bf16.msra.mxu0 %v2914_v10  ;;  %2455 = vmatpush1.bf16.msra.mxu1 %v2917_v14 }
 0x556   :  { %2425 = vmatprep.subr.bf16.mxu0 %v2921_v18  ;;  %2457 = vmatprep.subr.bf16.mxu1 %v2923_v19  ;;  %v1178_v30 = vadd.f32 %v1174_v16, %v1166_v62 }
 0x557   :  { %1442 = vmatprep.mubr.f32.mxu0 %v3496_v42  ;;  %1513 = vmatprep.mubr.f32.mxu1 %v3496_v42 }
 0x559   :  { %2427 = vmatpush1.bf16.msra.mxu0 %v2926_v23  ;;  %2459 = vmatpush1.bf16.msra.mxu1 %v2930_v27 }
 0x55a   :  { %2429 = vmatprep.subr.bf16.mxu0 %v2932_v28  ;;  %2461 = vmatprep.subr.bf16.mxu1 %v2934_v32 }
 0x55d   :  { %2431 = vmatpush1.bf16.msra.mxu0 %v2937_v36  ;;  %2463 = vmatpush1.bf16.msra.mxu1 %v2941_v40 }
 0x55e   :  { %2433 = vmatprep.subr.bf16.mxu0 %v2943_v41  ;;  %2465 = vmatprep.subr.bf16.mxu1 %v2946_v45 }
 0x561   :  { %2435 = vmatpush1.bf16.msra.mxu0 %v2949_v52  ;;  %2467 = vmatpush1.bf16.msra.mxu1 %v2953_v53 }
 0x562   :  { %2437 = vmatprep.subr.bf16.mxu0 %v2955_v54  ;;  %2469 = vmatprep.subr.bf16.mxu1 %v2958_v58 }
 0x565   :  { %2439 = vmatpush1.bf16.msra.mxu0 %v2961_v1  ;;  %2471 = vmatpush1.bf16.msra.mxu1 %v2965_v2 }
 0x566   :  { %2441 = vmatprep.subr.bf16.mxu0 %v2967_v3  ;;  %2473 = vmatprep.subr.bf16.mxu1 %v2970_v8 }
 0x569   :  { %2443 = vmatpush1.bf16.msra.mxu0 %v2973_v17  ;;  %2475 = vmatpush1.bf16.msra.mxu1 %v2977_v21 }
 0x56a   :  { %2445 = vmatprep.subr.bf16.mxu0 %v2979_v22  ;;  %2477 = vmatprep.subr.bf16.mxu1 %v2984_v29 }
 0x56d   :  { %2447 = vmatpush1.bf16.msra.mxu0 %v2988_v37  ;;  %2479 = vmatpush1.bf16.msra.mxu1 %v2992_v38 }
 0x56e   :  { %2449 = vmatprep.subr.bf16.mxu0 %v2994_v39  ;;  %2481 = vmatprep.subr.bf16.mxu1 %v2997_v44 }
 0x571   :  { %2451 = vmatpush1.bf16.msra.mxu0 %v3001_v49  ;;  %2483 = vmatpush1.bf16.msra.mxu1 %v3005_v50 }
 0x572   :  { %2485 = vmatprep.subr.bf16.mxu0 %v2910_v5  ;;  %2517 = vmatprep.subr.bf16.mxu1 %v2912_v9  ;;  %v1165_v5 = vmul.f32 %v1162_v13, %v3517_v6  ;;  %v1173_v9 = vmul.f32 %v1170_v46, %v3518_v0 }
 0x574   :  { %v1177_v56 = vadd.f32 %v1173_v9, %v1165_v5  ;;  %v1183_v9 = vadd.f32 %v1179_v7, %v3083_v63 }
 0x576   :  { %v1181_v60 = vadd.f32 %v1177_v56, %v3520_v26  ;;  %v1182_v56 = vadd.f32 %v1178_v30, %v3089_v55 }
 0x627   :  { %v1250_v35 = vpop.f32.mrb[10].mxu0  ;;  %v1321_v61 = vpop.f32.mrb[10].mxu1 }
 0x628   :  { %v1326_v51 = vadd.f32 %v1250_v35, %v1180_v4  ;;  %v1252_v12 = vpop.f32.mrb[11].mxu0  ;;  %v1323_v0 = vpop.f32.mrb[11].mxu1  ;;  %v1328_v20 = vadd.f32 %v1321_v61, %v1182_v56 }
 0x629   :  { %v1327_v57 = vadd.f32 %v1252_v12, %v1181_v60  ;;  %v1329_v59 = vadd.f32 %v1323_v0, %v1183_v9 }
 0x62a   :  { %v1923_v34 = vmul.f32 -1.442695, %v1326_v51 }
 0x62b   :  { %v1924_v5 = vmul.f32 -1.442695, %v1327_v57  ;;  %v1925_v26 = vmul.f32 -1.442695, %v1329_v59 }
 0x62c   :  { %2717 = vpow2.f32 %v1923_v34 }
 0x62d   :  { %2719 = vpow2.f32 %v1924_v5 }
 0x62e   :  { %2721 = vpow2.f32 %v1925_v26 }
 0x62f   :  { %2723 = vtanh.f32 %v1328_v20 }
 0x636   :  { %v2718_v47 = vpop.eup %2717 }
 0x637   :  { %v2720_v13 = vpop.eup %2719  ;;  %v1336_v33 = vadd.f32 1.0, %v2718_v47 }
 0x638   :  { %v1337_v46 = vadd.f32 1.0, %v2720_v13  ;;  %v2722_v4 = vpop.eup %2721 }
 0x639   :  { %2725 = vrcp.f32 %v1336_v33  ;;  %v2724_v60 = vpop.eup %2723  ;;  %v1346_v62 = vadd.f32 1.0, %v2722_v4 }
 0x63a   :  { %2727 = vrcp.f32 %v1337_v46 }
 0x63b   :  { %2729 = vrcp.f32 %v1346_v62 }
 0x643   :  { %v2726_v35 = vpop.eup %2725 }
 0x644   :  { %v2728_v7 = vpop.eup %2727  ;;  %v1350_v51 = vmul.f32 %v2726_v35, %v2724_v60 }
 0x645   :  { %v1349_v0 = vmul.f32 %v2728_v7, %v3300_v43  ;;  %v2730_v30 = vpop.eup %2729 }
 0x647   :  { %v3354_v16 = vadd.f32 %v1350_v51, %v1349_v0  ;;  %v102_v0 = vld [vmem:[#allocation5 + $0x20] sm:$0xff] }
 0x649   :  { %2731 = vtanh.f32 %v3354_v16 }
 0x653   :  { %v2732_v61 = vpop.eup %2731 }
 0x654   :  { %v1353_v26 = vmul.f32 %v2732_v61, %v2730_v30  ;;  %v103_v30 = vld [vmem:[#allocation5 + $0x50] sm:$0xff] }
 0x655   :  { %v2549_v61 = vpack.c.bf16 %v103_v30, %v102_v0 }
 0x656   :  { %1443 = vmatmul.mubr.f32.vlgmr.msra.gmra.mrb[12].mxu0 %v1353_v26  ;;  %1514 = vmatmul.mubr.f32.vlgmr.msra.gmra.mrb[12].mxu1 %v1353_v26  ;;  %v2859_v26 = vmov 0.0|0.0  }
 0x657   :  { %2487 = vmatpush1.bf16.msra.mxu0 %v2914_v10  ;;  %2519 = vmatpush1.bf16.msra.mxu1 %v2917_v14  ;;  %v2857_v10 = vmov 15   ;;  %v2858_v14 = vmov 14  }
 0x658   :  { %2489 = vmatprep.subr.bf16.mxu0 %v2921_v18  ;;  %2521 = vmatprep.subr.bf16.mxu1 %v2923_v19  ;;  %v1356_v18 = vpop.permute.xlu1 %1355 }
 0x659   :  { %1636 = vmatprep.mubr.f32.mxu0 %v3496_v42  ;;  %1707 = vmatprep.mubr.f32.mxu1 %v3496_v42 }
 0x65a   :  { %2635 = vset.pattern.permute.xlu1 %v2857_v10  ;;  %2634 = vset.pattern.permute.xlu0 %v2858_v14 }
 0x65b   :  { %2491 = vmatpush1.bf16.msra.mxu0 %v2926_v23  ;;  %2523 = vmatpush1.bf16.msra.mxu1 %v2930_v27  ;;  %v1358_v23 = vmul.f32 %v1356_v18, %v3512_v31 }
 0x65c   :  { %2493 = vmatprep.subr.bf16.mxu0 %v2932_v28  ;;  %2525 = vmatprep.subr.bf16.mxu1 %v2934_v32  ;;  %v1364_v19 = vpop.permute.xlu1 %1363  ;;  %v1359_v28 = vmul.f32 %v1356_v18, %v3517_v6  ;;  %v3522_v32 = vld [vmem:[#allocation14_spill] sm:$0xff] }
 0x65d   :  { %1557 = vperm.xlu1 %2635, %v3337_v48   ;;  %1549 = vperm.xlu0 %2634, %v3337_v48   ;;  %v1366_v27 = vmul.f32 %v1364_v19, %v3511_v15 }
 0x65f   :  { %2495 = vmatpush1.bf16.msra.mxu0 %v2937_v36  ;;  %2527 = vmatpush1.bf16.msra.mxu1 %v2941_v40  ;;  %v1367_v36 = vmul.f32 %v1364_v19, %v3522_v32  ;;  %v1370_v40 = vadd.f32 %v1366_v27, %v1358_v23  ;;  %v108_v27 = vld [vmem:[#allocation5 + $0x140] sm:$0xff] }
 0x660   :  { %2497 = vmatprep.subr.bf16.mxu0 %v2943_v41  ;;  %2529 = vmatprep.subr.bf16.mxu1 %v2946_v45  ;;  %v1361_v45 = vmul.f32 %v1356_v18, %v3514_v11 }
 0x661   :  { %2636 = vset.pattern.permute.xlu0 %v2857_v10  ;;  %v1371_v41 = vadd.f32 %v1367_v36, %v1359_v28  ;;  %v105_v10 = vld [vmem:[#allocation5 + $0xb0] sm:$0xff] }
 0x662   :  { %v109_v28 = vld [vmem:[#allocation5 + $0x170] sm:$0xff] }
 0x663   :  { %2499 = vmatpush1.bf16.msra.mxu0 %v2949_v52  ;;  %2531 = vmatpush1.bf16.msra.mxu1 %v2953_v53  ;;  %v3523_v52 = vld [vmem:[#allocation17_spill] sm:$0xff]  ;;  %v2558_v36 = vpack.c.bf16 %v109_v28, %v108_v27 }
 0x664   :  { %2501 = vmatprep.subr.bf16.mxu0 %v2955_v54  ;;  %2533 = vmatprep.subr.bf16.mxu1 %v2958_v58  ;;  %v1369_v53 = vmul.f32 %v1364_v19, %v3523_v52  ;;  %v1374_v54 = vadd.f32 %v1370_v40, %v3515_v25  ;;  %v110_v40 = vld [vmem:[#allocation5 + $0x1a0] sm:$0xff] }
 0x667   :  { %2503 = vmatpush1.bf16.msra.mxu0 %v2961_v1  ;;  %2535 = vmatpush1.bf16.msra.mxu1 %v2965_v2  ;;  %v3524_v2 = vld [vmem:[#allocation19_spill] sm:$0xff] }
 0x668   :  { %2505 = vmatprep.subr.bf16.mxu0 %v2967_v3  ;;  %2537 = vmatprep.subr.bf16.mxu1 %v2970_v8  ;;  %v1375_v3 = vadd.f32 %v1371_v41, %v3524_v2  ;;  %v111_v41 = vld [vmem:[#allocation5 + $0x1d0] sm:$0xff] }
 0x66b   :  { %2507 = vmatpush1.bf16.msra.mxu0 %v2973_v17  ;;  %2539 = vmatpush1.bf16.msra.mxu1 %v2977_v21 }
 0x66c   :  { %2509 = vmatprep.subr.bf16.mxu0 %v2979_v22  ;;  %2541 = vmatprep.subr.bf16.mxu1 %v2984_v29  ;;  %v1373_v29 = vadd.f32 %v1369_v53, %v1361_v45  ;;  %v2561_v45 = vpack.c.bf16 %v111_v41, %v110_v40  ;;  %v112_v53 = vld [vmem:[#allocation5 + $0x200] sm:$0xff] }
 0x66f   :  { %2511 = vmatpush1.bf16.msra.mxu0 %v2988_v37  ;;  %2543 = vmatpush1.bf16.msra.mxu1 %v2992_v38  ;;  %v3525_v37 = vld [vmem:[#allocation20_spill] sm:$0xff] }
 0x670   :  { %2513 = vmatprep.subr.bf16.mxu0 %v2994_v39  ;;  %2545 = vmatprep.subr.bf16.mxu1 %v2997_v44  ;;  %v1360_v38 = vmul.f32 %v1356_v18, %v3525_v37  ;;  %v1368_v39 = vmul.f32 %v1364_v19, %v3521_v24  ;;  %v106_v18 = vld [vmem:[#allocation5 + $0xe0] sm:$0xff]  ;;  %v107_v19 = vld [vmem:[#allocation5 + $0x110] sm:$0xff] }
 0x671   :  { %v2555_v23 = vpack.c.bf16 %v107_v19, %v106_v18 }
 0x672   :  { %v1372_v33 = vadd.f32 %v1368_v39, %v1360_v38  ;;  %v119_v38 = vld [vmem:[#allocation5 + $0x58] sm:$0xff]  ;;  %v120_v39 = vld [vmem:[#allocation5 + $0x88] sm:$0xff] }
 0x673   :  { %2515 = vmatpush1.bf16.msra.mxu0 %v3001_v49  ;;  %2547 = vmatpush1.bf16.msra.mxu1 %v3005_v50  ;;  %v1377_v50 = vadd.f32 %v1373_v29, %v3083_v63  ;;  %v118_v29 = vld [vmem:[#allocation5 + $0x28] sm:$0xff] }
 0x674   :  { %v1376_v48 = vadd.f32 %v1372_v33, %v3089_v55  ;;  %2548 = vmatprep.subr.bf16.mxu0 %v2859_v26  ;;  %2572 = vmatprep.subr.bf16.mxu1 %v2859_v26  ;;  %v123_v33 = vld [vmem:[#allocation5 + $0x118] sm:$0xff] }
 0x729   :  { %v1444_v58 = vpop.f32.mrb[12].mxu0  ;;  %v1515_v1 = vpop.f32.mrb[12].mxu1 }
 0x72a   :  { %v1520_v8 = vadd.f32 %v1444_v58, %v1374_v54  ;;  %v1446_v17 = vpop.f32.mrb[13].mxu0  ;;  %v1517_v21 = vpop.f32.mrb[13].mxu1  ;;  %v1522_v57 = vadd.f32 %v1515_v1, %v1376_v48  ;;  %v113_v54 = vld [vmem:[#allocation5 + $0x230] sm:$0xff]  ;;  %v114_v58 = vld [vmem:[#allocation5 + $0x260] sm:$0xff]  ;;  %v124_v48 = vld [vmem:[#allocation5 + $0x148] sm:$0xff] }
 0x72b   :  { %v1521_v22 = vadd.f32 %v1446_v17, %v1375_v3  ;;  %v1523_v43 = vadd.f32 %v1517_v21, %v1377_v50  ;;  %v2564_v1 = vpack.c.bf16 %v113_v54, %v112_v53  ;;  %v115_v3 = vld [vmem:[#allocation5 + $0x290] sm:$0xff]  ;;  %v116_v17 = vld [vmem:[#allocation5 + $0x2c0] sm:$0xff] }
 0x72c   :  { %v1926_v44 = vmul.f32 -1.442695, %v1520_v8  ;;  %v2567_v8 = vpack.c.bf16 %v115_v3, %v114_v58  ;;  %v117_v21 = vld [vmem:[#allocation5 + $0x2f0] sm:$0xff] }
 0x72d   :  { %v1927_v49 = vmul.f32 -1.442695, %v1521_v22  ;;  %v1928_v12 = vmul.f32 -1.442695, %v1523_v43  ;;  %v2570_v22 = vpack.c.bf16 %v117_v21, %v116_v17 }
 0x72e   :  { %2733 = vpow2.f32 %v1926_v44  ;;  %v2573_v44 = vpack.c.bf16 %v119_v38, %v118_v29 }
 0x72f   :  { %2735 = vpow2.f32 %v1927_v49  ;;  %v121_v49 = vld [vmem:[#allocation5 + $0xb8] sm:$0xff] }
 0x730   :  { %2737 = vpow2.f32 %v1928_v12  ;;  %v2576_v50 = vpack.c.bf16 %v121_v49, %v120_v39  ;;  %v125_v12 = vld [vmem:[#allocation5 + $0x178] sm:$0xff]  ;;  %v132_v39 = vld [vmem:[#allocation5 + $0x2c8] sm:$0xff] }
 0x731   :  { %2739 = vtanh.f32 %v1522_v57  ;;  %v2582_v57 = vpack.c.bf16 %v125_v12, %v124_v48 }
 0x738   :  { %v2734_v34 = vpop.eup %2733 }
 0x739   :  { %v2736_v5 = vpop.eup %2735  ;;  %v1530_v9 = vadd.f32 1.0, %v2734_v34  ;;  %v126_v34 = vld [vmem:[#allocation5 + $0x1a8] sm:$0xff] }
 0x73a   :  { %v1531_v59 = vadd.f32 1.0, %v2736_v5  ;;  %v2738_v56 = vpop.eup %2737  ;;  %v127_v5 = vld [vmem:[#allocation5 + $0x1d8] sm:$0xff] }
 0x73b   :  { %2741 = vrcp.f32 %v1530_v9  ;;  %v2740_v20 = vpop.eup %2739  ;;  %v1540_v4 = vadd.f32 1.0, %v2738_v56  ;;  %v2585_v9 = vpack.c.bf16 %v127_v5, %v126_v34  ;;  %v129_v56 = vld [vmem:[#allocation5 + $0x238] sm:$0xff] }
 0x73c   :  { %2743 = vrcp.f32 %v1531_v59  ;;  %v128_v59 = vld [vmem:[#allocation5 + $0x208] sm:$0xff] }
 0x73d   :  { %2745 = vrcp.f32 %v1540_v4  ;;  %v1558_v4 = vpop.permute.xlu1 %1557 }
 0x745   :  { %v2742_v47 = vpop.eup %2741 }
 0x746   :  { %v2744_v13 = vpop.eup %2743  ;;  %v1544_v46 = vmul.f32 %v2742_v47, %v2740_v20  ;;  %v2588_v20 = vpack.c.bf16 %v129_v56, %v128_v59  ;;  %v130_v47 = vld [vmem:[#allocation5 + $0x268] sm:$0xff] }
 0x747   :  { %v1543_v60 = vmul.f32 %v2744_v13, %v3354_v16  ;;  %v2746_v7 = vpop.eup %2745  ;;  %v104_v16 = vld [vmem:[#allocation5 + $0x80] sm:$0xff]  ;;  %v131_v13 = vld [vmem:[#allocation5 + $0x298] sm:$0xff] }
 0x748   :  { %v2552_v14 = vpack.c.bf16 %v105_v10, %v104_v16  ;;  %v1563_v16 = vmul.f32 %v1558_v4, %v3523_v52 }
 0x749   :  { %v3404_v35 = vadd.f32 %v1544_v46, %v1543_v60  ;;  %v2591_v46 = vpack.c.bf16 %v131_v13, %v130_v47  ;;  %v1550_v60 = vpop.permute.xlu0 %1549 }
 0x74a   :  { %v1553_v0 = vmul.f32 %v1550_v60, %v3517_v6  ;;  %v1555_v10 = vmul.f32 %v1550_v60, %v3514_v11 }
 0x74b   :  { %2747 = vtanh.f32 %v3404_v35 }
 0x755   :  { %v2748_v51 = vpop.eup %2747 }
 0x756   :  { %v1547_v62 = vmul.f32 %v2748_v51, %v2746_v7  ;;  %v1560_v7 = vmul.f32 %v1558_v4, %v3511_v15  ;;  %v1552_v51 = vmul.f32 %v1550_v60, %v3512_v31  ;;  %v1562_v15 = vmul.f32 %v1558_v4, %v3521_v24 }
 0x757   :  { %v1554_v31 = vmul.f32 %v1550_v60, %v3525_v37 }
 0x758   :  { %1637 = vmatmul.mubr.f32.vlgmr.msra.gmra.mrb[14].mxu0 %v1547_v62  ;;  %1708 = vmatmul.mubr.f32.vlgmr.msra.gmra.mrb[14].mxu1 %v1547_v62  ;;  %v1561_v62 = vmul.f32 %v1558_v4, %v3522_v32  ;;  %v1564_v30 = vadd.f32 %v1560_v7, %v1552_v51 }
 0x759   :  { %2550 = vmatpush3.bf16.msra.mxu0 %v2549_v61  ;;  %1998 = vmatprep.mubr.msk.f32.mxu0 %vm2860_vm0, %v3496_v42  ;;  %v1566_v11 = vadd.f32 %v1562_v15, %v1554_v31 }
 0x75a   :  { %2551 = vmatprep.subr.bf16.mxu0 %v2859_v26  ;;  %2033 = vmatprep.mubr.msk.f32.mxu1 %vm2860_vm0, %v3496_v42  ;;  %v122_v42 = vld [vmem:[#allocation5 + $0xe8] sm:$0xff]  ;;  %v1565_v61 = vadd.f32 %v1561_v62, %v1553_v0 }
 0x75b   :  { %2574 = vmatpush3.bf16.msra.mxu1 %v2573_v44  ;;  %v2579_v43 = vpack.c.bf16 %v123_v33, %v122_v42  ;;  %v133_v44 = vld [vmem:[#allocation5 + $0x2f8] sm:$0xff] }
 0x75c   :  { %2575 = vmatprep.subr.bf16.mxu1 %v2859_v26  ;;  %v2594_v49 = vpack.c.bf16 %v133_v44, %v132_v39  ;;  %v3526_v42 = vld [vmem:[#allocation15_spill] sm:$0xff] }
 0x75d   :  { %2553 = vmatpush3.bf16.msra.mxu0 %v2552_v14  ;;  %v1568_v14 = vadd.f32 %v1564_v30, %v3515_v25 }
 0x75e   :  { %2554 = vmatprep.subr.bf16.mxu0 %v2859_v26 }
 0x75f   :  { %2577 = vmatpush3.bf16.msra.mxu1 %v2576_v50  ;;  %v138_v50 = vld [vmem:[#allocation5 + $0x320] sm:$0xff] }
 0x760   :  { %2578 = vmatprep.subr.bf16.mxu1 %v2859_v26  ;;  %v1745_v33 = vrot.slane %v138_v50, %v3526_v42 }
 0x761   :  { %2556 = vmatpush3.bf16.msra.mxu0 %v2555_v23  ;;  %v1567_v23 = vadd.f32 %v1563_v16, %v1555_v10 }
 0x762   :  { %2557 = vmatprep.subr.bf16.mxu0 %v2859_v26 }
 0x763   :  { %2580 = vmatpush3.bf16.msra.mxu1 %v2579_v43  ;;  %v1571_v52 = vadd.f32 %v1567_v23, %v3083_v63 }
 0x764   :  { %2581 = vmatprep.subr.bf16.mxu1 %v2859_v26 }
 0x765   :  { %2559 = vmatpush3.bf16.msra.mxu0 %v2558_v36 }
 0x766   :  { %2560 = vmatprep.subr.bf16.mxu0 %v2859_v26 }
 0x767   :  { %2583 = vmatpush3.bf16.msra.mxu1 %v2582_v57 }
 0x768   :  { %2584 = vmatprep.subr.bf16.mxu1 %v2859_v26 }
 0x769   :  { %2562 = vmatpush3.bf16.msra.mxu0 %v2561_v45 }
 0x76a   :  { %2563 = vmatprep.subr.bf16.mxu0 %v2859_v26 }
 0x76b   :  { %2586 = vmatpush3.bf16.msra.mxu1 %v2585_v9 }
 0x76c   :  { %2587 = vmatprep.subr.bf16.mxu1 %v2859_v26 }
 0x76d   :  { %2565 = vmatpush3.bf16.msra.mxu0 %v2564_v1 }
 0x76e   :  { %2566 = vmatprep.subr.bf16.mxu0 %v2859_v26 }
 0x76f   :  { %2589 = vmatpush3.bf16.msra.mxu1 %v2588_v20 }
 0x770   :  { %2590 = vmatprep.subr.bf16.mxu1 %v2859_v26 }
 0x771   :  { %2568 = vmatpush3.bf16.msra.mxu0 %v2567_v8 }
 0x772   :  { %2569 = vmatprep.subr.bf16.mxu0 %v2859_v26 }
 0x773   :  { %2592 = vmatpush3.bf16.msra.mxu1 %v2591_v46 }
 0x774   :  { %2593 = vmatprep.subr.bf16.mxu1 %v2859_v26  ;;  %v1569_v26 = vadd.f32 %v1565_v61, %v3524_v2  ;;  %v1570_v2 = vadd.f32 %v1566_v11, %v3089_v55 }
 0x775   :  { %2571 = vmatpush3.bf16.msra.mxu0 %v2570_v22 }
 0x777   :  { %2595 = vmatpush3.bf16.msra.mxu1 %v2594_v49 }
 0x82b   :  { %v1638_v18 = vpop.f32.mrb[14].mxu0  ;;  %v1709_v19 = vpop.f32.mrb[14].mxu1 }
 0x82c   :  { %v1714_v32 = vadd.f32 %v1638_v18, %v1568_v14  ;;  %v1640_v27 = vpop.f32.mrb[15].mxu0  ;;  %v1711_v6 = vpop.f32.mrb[15].mxu1  ;;  %v1716_v45 = vadd.f32 %v1709_v19, %v1570_v2 }
 0x82d   :  { %v1715_v28 = vadd.f32 %v1640_v27, %v1569_v26  ;;  %v1717_v25 = vadd.f32 %v1711_v6, %v1571_v52 }
 0x82e   :  { %v1929_v36 = vmul.f32 -1.442695, %v1714_v32 }
 0x82f   :  { %v1930_v40 = vmul.f32 -1.442695, %v1715_v28  ;;  %v1931_v41 = vmul.f32 -1.442695, %v1717_v25 }
 0x830   :  { %2749 = vpow2.f32 %v1929_v36 }
 0x831   :  { %2751 = vpow2.f32 %v1930_v40 }
 0x832   :  { %2753 = vpow2.f32 %v1931_v41 }
 0x833   :  { %2755 = vtanh.f32 %v1716_v45 }
 0x83a   :  { %v2750_v53 = vpop.eup %2749 }
 0x83b   :  { %v2752_v24 = vpop.eup %2751  ;;  %v1724_v54 = vadd.f32 1.0, %v2750_v53 }
 0x83c   :  { %v1725_v37 = vadd.f32 1.0, %v2752_v24  ;;  %v2754_v58 = vpop.eup %2753 }
 0x83d   :  { %2757 = vrcp.f32 %v1724_v54  ;;  %v2756_v1 = vpop.eup %2755  ;;  %v1734_v17 = vadd.f32 1.0, %v2754_v58 }
 0x83e   :  { %2759 = vrcp.f32 %v1725_v37 }
 0x83f   :  { %2761 = vrcp.f32 %v1734_v17 }
 0x847   :  { %v2758_v3 = vpop.eup %2757 }
 0x848   :  { %v2760_v63 = vpop.eup %2759  ;;  %v1738_v8 = vmul.f32 %v2758_v3, %v2756_v1 }
 0x849   :  { %v1737_v21 = vmul.f32 %v2760_v63, %v3404_v35  ;;  %v2762_v55 = vpop.eup %2761  ;;  %v139_v35 = vld [vmem:[#allocation5 + $0x328] sm:$0xff] }
 0x84a   :  { %v1820_v34 = vrot.slane %v139_v35, %v3526_v42 }
 0x84b   :  { %v1739_v22 = vadd.f32 %v1738_v8, %v1737_v21 }
 0x84d   :  { %2763 = vtanh.f32 %v1739_v22 }
 0x857   :  { %v2764_v29 = vpop.eup %2763 }
 0x858   :  { %v1741_v38 = vmul.f32 %v2764_v29, %v2762_v55 }
 0x85a   :  { %1999 = vmatmul.mubr.f32.vlgmr.msra.gmra.mrb[16].mxu0 %v1741_v38 }
 0x92d   :  { %v1812_v43 = vpop.f32.mrb[16].mxu0 }
 0x92e   :  { %v1813_v48 = vadd.f32 %v1812_v43, %v1745_v33  ;;  %v2000_v12 = vpop.f32.mrb[17].mxu0 }
 0x930   :  { %v1816_v57 = vmax.f32 %v1813_v48, 0.0 }
 0x932   :  { %2034 = vmatmul.mubr.f32.vlgmr.msra.gmra.mrb[16].mxu1 %v1816_v57 }
 0xa05   :  { %v1887_v5 = vpop.f32.mrb[16].mxu1 }
 0xa06   :  { %v1888_v9 = vadd.f32 %v1887_v5, %v1820_v34  ;;  %v2035_v59 = vpop.f32.mrb[17].mxu1 }
 0xa08   :  { %1891 = vst [vmem:[#allocation7] sm:$0x3] %v1888_v9 }
 0xa09   :  { %2821 = shalt.err (!%p2818_p6)
}
 0xa0a   :  { %s2822_s10 = scalar_lea.hbm %s3454_s2, 32 }
 0xa0b   :  { %p2823_p7 = scmp.ne.s32.totalorder %s3454_s2, %s2822_s10  ;;  %p2826_p8 = scmp.lt.u32.totalorder %s2822_s10, %s3454_s2 }
 0xa0d   :  { %p2828_p9 = pnand %p2826_p8, %p2823_p7 }
 0xa0f   :  { %2831 = shalt.err (!%p2828_p9)
}
 0xa10   :  { %1901 = dma.vmem_to_hbm [thread:$0]  %s1899_s6, 32, %s3454_s2, [#allocation4]  }
 0xa11   :  { %2836 = dma.done.wait [#allocation4], 32  }
 0xa12   :  { %2837 = vsyncadd [#allocation4], 4294967264 }
 0xa13   :  { %1905 = vsyncpa [#allocation3], 1 }
 0xa14   :  { %1906 = vsyncpa [#allocation6], 1 }
 0xa15   :  { %1907 = vsyncpa [#allocation4], 1 }

</bundles_post_ra>
